<compile_context>
chip_gen: v5e
topology: v5e:2x2
jax: 0.10.0
libtpu: 0.0.40
codegen_flags: <defaults>
</compile_context>

<pallas_src>
import functools
import math

import jax
import jax.numpy as jnp
from jax import lax
from jax.experimental import pallas as pl
from jax.experimental.pallas import tpu as pltpu


def _rup(x, m):
    return (x + m - 1) // m * m


# ----------------------------------------------------------------------------------
# Kernel 1: tiled GEMM  out = act(A @ W + bias)   (im2col path, stride-2 convs)
# ----------------------------------------------------------------------------------
def _gemm_kernel(a_ref, w_ref, b_ref, o_ref, acc_ref, *, apply_relu):
    k = pl.program_id(2)

    @pl.when(k == 0)
    def _():
        acc_ref[...] = jnp.zeros_like(acc_ref)

    acc_ref[...] += jnp.dot(a_ref[...], w_ref[...],
                            preferred_element_type=jnp.float32)

    @pl.when(k == pl.num_programs(2) - 1)
    def _():
        y = acc_ref[...] + b_ref[...]
        if apply_relu:
            y = jnp.maximum(y, 0.0)
        o_ref[...] = y.astype(o_ref.dtype)


def _fused_gemm(a, w, bias, apply_relu):
    """a: (M, K) bf16, w: (K, N) bf16, bias: (1, N) f32 -> (M, N) bf16."""
    M, K = a.shape
    N = w.shape[1]
    # N tile (N here is always 64/128/256/512 so tn divides N).
    tn = min(N, 256)
    # M tile: amortize per-step overhead, keep >=2 parallel tiles when possible.
    if M >= 4096:
        tm = 512
    elif M >= 1024:
        tm = 256
    elif M > 128:
        tm = _rup(-(-M // 2), 16)
    else:
        tm = _rup(M, 16)
    # K tile: single full-K step when K is small, else 512-wide accumulation steps.
    if K <= 1024:
        kp = _rup(K, 16)
        tk = kp
    else:
        kp = _rup(K, 512)
        tk = 512
    mp = _rup(M, tm)
    a_p = jnp.pad(a, ((0, mp - M), (0, kp - K)))
    w_p = jnp.pad(w, ((0, kp - K), (0, 0)))

    out = pl.pallas_call(
        functools.partial(_gemm_kernel, apply_relu=apply_relu),
        out_shape=jax.ShapeDtypeStruct((mp, N), jnp.bfloat16),
        grid_spec=pltpu.PrefetchScalarGridSpec(
            num_scalar_prefetch=0,
            grid=(mp // tm, N // tn, kp // tk),
            in_specs=[
                pl.BlockSpec((tm, tk), lambda i, j, k: (i, k)),
                pl.BlockSpec((tk, tn), lambda i, j, k: (k, j)),
                pl.BlockSpec((1, tn), lambda i, j, k: (0, j)),
            ],
            out_specs=pl.BlockSpec((tm, tn), lambda i, j, k: (i, j)),
            scratch_shapes=[pltpu.VMEM((tm, tn), jnp.float32)],
        ),
        compiler_params=pltpu.CompilerParams(
            dimension_semantics=("parallel", "parallel", "arbitrary"),
            vmem_limit_bytes=32 * 1024 * 1024),
    )(a_p, w_p, bias)
    return out[:M, :N]


def _im2col(x, kh, kw, stride, pad):
    B, H, W, C = x.shape
    Ho = (H + 2 * pad - kh) // stride + 1
    Wo = (W + 2 * pad - kw) // stride + 1
    xp = jnp.pad(x, ((0, 0), (pad, pad), (pad, pad), (0, 0))) if pad else x
    cols = [xp[:, di:di + stride * Ho:stride, dj:dj + stride * Wo:stride, :]
            for di in range(kh) for dj in range(kw)]
    patches = jnp.concatenate(cols, axis=-1)            # (B, Ho, Wo, kh*kw*C)
    return patches.reshape(B * Ho * Wo, kh * kw * C), Ho, Wo


@functools.partial(jax.jit, static_argnames=("stride", "pad", "apply_relu"))
def conv_bn_gemm(x, w_mat, bias, *, stride, pad, apply_relu):
    """Strided Conv2d + folded-BN (+ReLU).  x: (B,H,W,Cin) bf16; w_mat: (k*k*Cin, Cout) bf16."""
    B = x.shape[0]
    cin = x.shape[-1]
    cout = w_mat.shape[1]
    k = int(round(math.sqrt(w_mat.shape[0] // cin)))
    patches, Ho, Wo = _im2col(x, k, k, stride, pad)
    out = _fused_gemm(patches, w_mat, bias, apply_relu)
    return out.reshape(B, Ho, Wo, cout)


# ----------------------------------------------------------------------------------
# Kernel 2: direct (im2col-free) stride-1 convolution.
# The padded image is flattened to (Ho*Wp + halo, Cin) per batch element and kept in
# VMEM; outputs are computed on the padded-width ("wide") grid, every tap is a shifted
# in-VMEM slice feeding an MXU matmul, and the wide output is narrowed in XLA.
# ----------------------------------------------------------------------------------
def _direct_conv_kernel(a_ref, w_ref, b_ref, o_ref, *,
                        ksize, wp, mchunk, nchunks, halo, apply_relu):
    k2 = ksize * ksize
    tn = o_ref.shape[-1]

    def compute_chunk(base):
        a_blk = a_ref[pl.ds(base, mchunk + halo), :]          # (mchunk+halo, Cin) bf16
        acc = jnp.zeros((mchunk, tn), jnp.float32)
        for t in range(k2):
            off = (t // ksize) * wp + (t % ksize)             # static tap offset
            acc = acc + jnp.dot(a_blk[off:off + mchunk, :], w_ref[t],
                                preferred_element_type=jnp.float32)
        y = acc + b_ref[...]
        if apply_relu:
            y = jnp.maximum(y, 0.0)
        o_ref[pl.ds(base, mchunk), :] = y.astype(o_ref.dtype)

    if nchunks == 1:
        compute_chunk(0)
    else:
        def body(i, carry):
            compute_chunk(pl.multiple_of(i * mchunk, mchunk))
            return carry
        lax.fori_loop(0, nchunks, body, 0)


@functools.partial(jax.jit, static_argnames=("pad", "apply_relu"))
def conv_bn_direct(x, w_dir, bias, *, pad, apply_relu, residual=None):
    """Stride-1 Conv2d + folded-BN (+ReLU) (+residual+ReLU) without HBM im2col.

    x: (B,H,W,Cin) bf16; w_dir: (k*k, Cin, Cout) bf16; bias: (1, Cout) f32.
    """
    B, H, W, cin = x.shape
    k2, _, cout = w_dir.shape
    k = int(round(math.sqrt(k2)))
    Hp, Wp = H + 2 * pad, W + 2 * pad
    Ho, Wo = Hp - k + 1, Wp - k + 1
    m_wide = Ho * Wp                                      # wide-grid output rows
    mchunk = _rup(m_wide, 16) if m_wide <= 512 else 512
    m_wide_p = _rup(m_wide, mchunk)
    nchunks = m_wide_p // mchunk
    halo = _rup((k - 1) * Wp + (k - 1), 16)
    lflat = m_wide_p + halo

    xp = jnp.pad(x, ((0, 0), (pad, pad), (pad, pad), (0, 0)))
    xflat = xp.reshape(B, Hp * Wp, cin)
    xflat = jnp.pad(xflat, ((0, 0), (0, lflat - Hp * Wp), (0, 0)))

    # Output-channel tile: keep the (k2, cin, tn) weight block <= ~6 MiB of VMEM.
    tn = min(cout, 256)
    while tn > 128 and k2 * cin * tn * 2 > 6 * 1024 * 1024:
        tn //= 2

    out_wide = pl.pallas_call(
        functools.partial(_direct_conv_kernel, ksize=k, wp=Wp, mchunk=mchunk,
                          nchunks=nchunks, halo=halo, apply_relu=apply_relu),
        out_shape=jax.ShapeDtypeStruct((B, m_wide_p, cout), jnp.bfloat16),
        grid_spec=pltpu.PrefetchScalarGridSpec(
            num_scalar_prefetch=0,
            grid=(B, cout // tn),
            in_specs=[
                pl.BlockSpec((None, lflat, cin), lambda b, j: (b, 0, 0)),
                pl.BlockSpec((k2, cin, tn), lambda b, j: (0, 0, j)),
                pl.BlockSpec((1, tn), lambda b, j: (0, j)),
            ],
            out_specs=pl.BlockSpec((None, m_wide_p, tn), lambda b, j: (b, 0, j)),
        ),
        compiler_params=pltpu.CompilerParams(
            dimension_semantics=("parallel", "parallel"),
            vmem_limit_bytes=32 * 1024 * 1024),
    )(xflat, w_dir, bias)

    out = out_wide[:, :m_wide, :].reshape(B, Ho, Wp, cout)[:, :, :Wo, :]
    if residual is not None:
        out = jnp.maximum(out.astype(jnp.float32) + residual.astype(jnp.float32),
                          0.0).astype(jnp.bfloat16)
    return out


# ----------------------------------------------------------------------------------
# MaxPool2d(kernel=3, stride=2, padding=1): 9-window max, lane-dense (rows, 128) tiles.
# ----------------------------------------------------------------------------------
def _maxpool_kernel(x_ref, o_ref):
    o_ref[...] = jnp.max(x_ref[...], axis=0)


@jax.jit
def max_pool_3x3_s2_p1(x):
    B, H, W, C = x.shape
    Ho = (H + 2 - 3) // 2 + 1
    Wo = (W + 2 - 3) // 2 + 1
    xp = jnp.pad(x, ((0, 0), (1, 1), (1, 1), (0, 0)), constant_values=-1e30)
    wins = jnp.stack(
        [xp[:, di:di + 2 * Ho:2, dj:dj + 2 * Wo:2, :]
         for di in range(3) for dj in range(3)], axis=0)     # (9, B, Ho, Wo, C)
    total = B * Ho * Wo * C
    if total % 128 == 0:
        rows, lanes = total // 128, 128
    else:
        rows, lanes = B * Ho * Wo, C
    wins2 = wins.reshape(9, rows, lanes)
    tm = 512
    rows_p = _rup(rows, tm)
    wins2 = jnp.pad(wins2, ((0, 0), (0, rows_p - rows), (0, 0)))
    out = pl.pallas_call(
        _maxpool_kernel,
        out_shape=jax.ShapeDtypeStruct((rows_p, lanes), x.dtype),
        grid_spec=pltpu.PrefetchScalarGridSpec(
            num_scalar_prefetch=0,
            grid=(rows_p // tm,),
            in_specs=[pl.BlockSpec((9, tm, lanes), lambda i: (0, i, 0))],
            out_specs=pl.BlockSpec((tm, lanes), lambda i: (i, 0)),
        ),
        compiler_params=pltpu.CompilerParams(dimension_semantics=("parallel",)),
    )(wins2)
    return out[:rows].reshape(B, Ho, Wo, C)


# ----------------------------------------------------------------------------------
# Head: F.avg_pool2d(x, 7) + view + Linear(512, num_classes), fused in one kernel
# ----------------------------------------------------------------------------------
def _head_kernel(x_ref, w_ref, b_ref, o_ref):
    pooled = jnp.mean(x_ref[...].astype(jnp.float32), axis=1)     # (B, 512)
    o_ref[...] = jnp.dot(pooled, w_ref[...],
                         preferred_element_type=jnp.float32) + b_ref[...]


@jax.jit
def avgpool_fc(x, w_fc, b_fc):
    B, H, W, C = x.shape
    assert H == 7 and W == 7, "avg_pool2d(x, 7) expects a 7x7 feature map here"
    x3 = x.reshape(B, H * W, C)
    w_t = jnp.transpose(w_fc).astype(jnp.float32)                 # (512, num_classes)
    b2 = b_fc.reshape(1, -1).astype(jnp.float32)
    return pl.pallas_call(
        _head_kernel,
        out_shape=jax.ShapeDtypeStruct((B, w_fc.shape[0]), jnp.float32),
    )(x3, w_t, b2)


# ----------------------------------------------------------------------------------
# Parameter construction (deterministic, synthetic; BN folded into weights/bias)
# ----------------------------------------------------------------------------------
def make_conv_bn_params(key, cin, cout, k, layout):
    k1, k2_, k3, k4, k5 = jax.random.split(key, 5)
    fan_in = cin * k * k
    w = jax.random.normal(k1, (cout, cin, k, k), jnp.float32) * jnp.sqrt(2.0 / fan_in)
    gamma = 1.0 + 0.1 * jax.random.normal(k2_, (cout,), jnp.float32)
    beta = 0.1 * jax.random.normal(k3, (cout,), jnp.float32)
    running_mean = 0.1 * jax.random.normal(k4, (cout,), jnp.float32)
    running_var = 1.0 + 0.1 * jax.random.uniform(k5, (cout,), jnp.float32)
    scale = gamma / jnp.sqrt(running_var + 1e-5)
    bias = beta - running_mean * scale
    w_fold = w * scale[:, None, None, None]                 # BN scale folded into weights
    w_hwio = jnp.transpose(w_fold, (2, 3, 1, 0))            # (kh, kw, cin, cout)
    if layout == "direct":
        w_out = w_hwio.reshape(k * k, cin, cout).astype(jnp.bfloat16)
    else:
        w_out = w_hwio.reshape(k * k * cin, cout).astype(jnp.bfloat16)
    return {"w": w_out, "b": bias.reshape(1, cout).astype(jnp.float32)}


def make_block_params(key, cin, cout, same_shape):
    k1, k2_, k3 = jax.random.split(key, 3)
    conv1_layout = "direct" if same_shape else "gemm"       # stride-1 vs stride-2 conv1
    p = {"conv1": make_conv_bn_params(k1, cin, cout, 7, conv1_layout),
         "conv2": make_conv_bn_params(k2_, cout, cout, 3, "direct")}
    if not same_shape:
        p["short"] = make_conv_bn_params(k3, cin, cout, 1, "gemm")
    return p


def make_resnet34_params(key, num_classes=10):
    ks = jax.random.split(key, 7)

    def make_layer(k, cin, cout, n, stride):
        bks = jax.random.split(k, n)
        blocks = [make_block_params(bks[0], cin, cout, same_shape=(stride == 1))]
        for i in range(1, n):
            blocks.append(make_block_params(bks[i], cout, cout, True))
        return blocks

    return {
        "pre": make_conv_bn_params(ks[0], 3, 64, 7, "gemm"),
        "layer1": make_layer(ks[1], 64, 64, 3, 1),
        "layer2": make_layer(ks[2], 64, 128, 4, 2),
        "layer3": make_layer(ks[3], 128, 256, 6, 2),
        "layer4": make_layer(ks[4], 256, 512, 3, 2),
        "fc": {"w": jax.random.normal(ks[5], (num_classes, 512), jnp.float32) / jnp.sqrt(512.0),
               "b": 0.1 * jax.random.normal(ks[6], (num_classes,), jnp.float32)},
    }


# ----------------------------------------------------------------------------------
# Forward pass
# ----------------------------------------------------------------------------------
def block_forward(x, p):
    same_shape = "short" not in p
    if same_shape:
        h = conv_bn_direct(x, p["conv1"]["w"], p["conv1"]["b"],
                           pad=3, apply_relu=True)
        res = x
    else:
        h = conv_bn_gemm(x, p["conv1"]["w"], p["conv1"]["b"],
                         stride=2, pad=3, apply_relu=True)
        res = conv_bn_gemm(x, p["short"]["w"], p["short"]["b"],
                           stride=2, pad=0, apply_relu=False)
    # conv2 + BN via the direct kernel; residual add + final ReLU fused in the wrapper.
    return conv_bn_direct(h, p["conv2"]["w"], p["conv2"]["b"],
                          pad=1, apply_relu=False, residual=res)


def resnet34_forward(x_nchw, params):
    # Layout: NCHW (PyTorch convention) in -> NHWC bf16 for all TPU kernels.
    x = jnp.transpose(x_nchw, (0, 2, 3, 1)).astype(jnp.bfloat16)
    pre = params["pre"]
    x = conv_bn_gemm(x, pre["w"], pre["b"], stride=2, pad=1, apply_relu=True)
    x = max_pool_3x3_s2_p1(x)
    for layer in ("layer1", "layer2", "layer3", "layer4"):
        for bp in params[layer]:
            x = block_forward(x, bp)
    return avgpool_fc(x, params["fc"]["w"], params["fc"]["b"])


if __name__ == "__main__":
    root = jax.random.PRNGKey(0)
    pkey, xkey = jax.random.split(root)
    params = make_resnet34_params(pkey, num_classes=10)
    # Smallest canonical input consistent with avg_pool2d(x, 7) feeding Linear(512, 10).
    x = jax.random.normal(xkey, (2, 3, 224, 224), jnp.float32)   # NCHW, as in PyTorch
    logits = resnet34_forward(x, params)
    logits = jax.block_until_ready(logits)
    assert logits.shape == (2, 10), logits.shape
    assert bool(jnp.all(jnp.isfinite(logits)))
    print("KERNEL_OK")
</pallas_src>

<mosaic_0001>
module attributes {stable_mosaic.version = 11 : i64} {
  func.func @_gemm_kernel(%arg0: i32, %arg1: i32, %arg2: i32, %arg3: memref<512x160xbf16, #tpu.memory_space<vmem>>, %arg4: memref<160x64xbf16, #tpu.memory_space<vmem>>, %arg5: memref<1x64xf32, #tpu.memory_space<vmem>>, %arg6: memref<512x64xbf16, #tpu.memory_space<vmem>>, %arg7: memref<512x64xf32, #tpu.memory_space<vmem>>) attributes {dimension_semantics = [#tpu.dimension_semantics<parallel>, #tpu.dimension_semantics<parallel>, #tpu.dimension_semantics<arbitrary>], iteration_bounds = array<i64: 48, 1, 1>, scalar_prefetch = 0 : i64, scratch_operands = 1 : i64, tpu.core_type = #tpu.core_type<tc>, window_params = [{transform_indices = @transform_0, window_bounds = array<i64: 512, 160>}, {transform_indices = @transform_1, window_bounds = array<i64: 160, 64>}, {transform_indices = @transform_2, window_bounds = array<i64: 1, 64>}, {transform_indices = @transform_3, window_bounds = array<i64: 512, 64>}]} {
    %c0_i32 = arith.constant 0 : i32
    %0 = arith.cmpi eq, %arg2, %c0_i32 : i32
    %1 = arith.extui %0 : i1 to i32
    %c0_i32_0 = arith.constant 0 : i32
    %2 = arith.cmpi ne, %1, %c0_i32_0 : i32
    scf.if %2 {
      %cst_10 = arith.constant 0.000000e+00 : f32
      %12 = vector.broadcast %cst_10 : f32 to vector<512x64xf32>
      %c0_11 = arith.constant 0 : index
      %c0_12 = arith.constant 0 : index
      %13 = vector.load %arg7[%c0_11, %c0_12] : memref<512x64xf32, #tpu.memory_space<vmem>>, vector<512x64xf32>
      tpu.vector_store %arg7[%c0_11, %c0_12], %12 {strides = array<i32>} : memref<512x64xf32, #tpu.memory_space<vmem>>, vector<512x64xf32>,
    } else {
    }
    %c0 = arith.constant 0 : index
    %c0_1 = arith.constant 0 : index
    %3 = vector.load %arg7[%c0, %c0_1] : memref<512x64xf32, #tpu.memory_space<vmem>>, vector<512x64xf32>
    %c0_2 = arith.constant 0 : index
    %c0_3 = arith.constant 0 : index
    %4 = vector.load %arg3[%c0_2, %c0_3] : memref<512x160xbf16, #tpu.memory_space<vmem>>, vector<512x160xbf16>
    %c0_4 = arith.constant 0 : index
    %c0_5 = arith.constant 0 : index
    %5 = vector.load %arg4[%c0_4, %c0_5] : memref<160x64xbf16, #tpu.memory_space<vmem>>, vector<160x64xbf16>
    %cst = arith.constant dense<0.000000e+00> : vector<512x64xf32>
    %6 = tpu.matmul %4, %5, %cst {dimension_numbers = #tpu.dot_dimension_numbers<[1], [0], [0], [1], [0, 0, 1, 1], [], []>} : vector<512x160xbf16>, vector<160x64xbf16>, vector<512x64xf32> -> vector<512x64xf32>
    %7 = arith.addf %3, %6 : vector<512x64xf32>
    %c0_6 = arith.constant 0 : index
    %c0_7 = arith.constant 0 : index
    %8 = vector.load %arg7[%c0_6, %c0_7] : memref<512x64xf32, #tpu.memory_space<vmem>>, vector<512x64xf32>
    tpu.vector_store %arg7[%c0_6, %c0_7], %7 {strides = array<i32>} : memref<512x64xf32, #tpu.memory_space<vmem>>, vector<512x64xf32>,
    %c0_i32_8 = arith.constant 0 : i32
    %9 = arith.cmpi eq, %arg2, %c0_i32_8 : i32
    %10 = arith.extui %9 : i1 to i32
    %c0_i32_9 = arith.constant 0 : i32
    %11 = arith.cmpi ne, %10, %c0_i32_9 : i32
    scf.if %11 {
      %c0_10 = arith.constant 0 : index
      %c0_11 = arith.constant 0 : index
      %12 = vector.load %arg7[%c0_10, %c0_11] : memref<512x64xf32, #tpu.memory_space<vmem>>, vector<512x64xf32>
      %c0_12 = arith.constant 0 : index
      %c0_13 = arith.constant 0 : index
      %13 = vector.load %arg5[%c0_12, %c0_13] : memref<1x64xf32, #tpu.memory_space<vmem>>, vector<1x64xf32>
      %14 = vector.broadcast %13 : vector<1x64xf32> to vector<512x64xf32>
      %15 = arith.addf %12, %14 : vector<512x64xf32>
      %cst_14 = arith.constant 0.000000e+00 : f32
      %16 = vector.broadcast %cst_14 : f32 to vector<512x64xf32>
      %17 = arith.maximumf %15, %16 : vector<512x64xf32>
      %18 = arith.truncf %17 : vector<512x64xf32> to vector<512x64xbf16>
      %c0_15 = arith.constant 0 : index
      %c0_16 = arith.constant 0 : index
      %19 = vector.load %arg6[%c0_15, %c0_16] : memref<512x64xbf16, #tpu.memory_space<vmem>>, vector<512x64xbf16>
      tpu.vector_store %arg6[%c0_15, %c0_16], %18 {strides = array<i32>} : memref<512x64xbf16, #tpu.memory_space<vmem>>, vector<512x64xbf16>,
    } else {
    }
    return
  }
  func.func @transform_0(%arg0: i32, %arg1: i32, %arg2: i32) -> (i32, i32) {
    %c0_i32 = arith.constant 0 : i32
    return %arg0, %arg2 : i32, i32
  }
  func.func @transform_1(%arg0: i32, %arg1: i32, %arg2: i32) -> (i32, i32) {
    %c0_i32 = arith.constant 0 : i32
    return %arg2, %arg1 : i32, i32
  }
  func.func @transform_2(%arg0: i32, %arg1: i32, %arg2: i32) -> (i32, i32) {
    %c0_i32 = arith.constant 0 : i32
    %c0_i32_0 = arith.constant 0 : i32
    return %c0_i32, %arg1 : i32, i32
  }
  func.func @transform_3(%arg0: i32, %arg1: i32, %arg2: i32) -> (i32, i32) {
    %c0_i32 = arith.constant 0 : i32
    return %arg0, %arg1 : i32, i32
  }
}

</mosaic_0001>

<bundles_post_ra>
// kernel: conv_bn_gemm.1
= control target key start
LH: loop header
LB: loop body
LE: loop exit
PB: predicated region body
PF: predicated region fallthrough
CT: control target
= control target key end

     0   :  { %s2338_s12 = smov 0   ;;  %s2340_s13 = smov 0   ;;  %s3116_s0 = inlined_call_operand.vmem [shape: bf16[24576,160], index: 0, kind: input, shape index: {}]   ;;  %s3117_s1 = inlined_call_operand.vmem [shape: bf16[160,64], index: 1, kind: input, shape index: {}]   ;;  %s3118_s2 = inlined_call_operand.vmem [shape: f32[1,64], index: 2, kind: input, shape index: {}]   ;;  %s3119_s3 = inlined_call_operand.vmem [shape: bf16[24576,64], index: 3, kind: output, shape index: {}]  }
   0x1   :  { %s2342_s14 = smov 0  }
   0x2 LB: > { %s32_s15 = sadd.s32 1, %s2311_s13  ;;  %p1845_p0 = scmp.ge.s32.totalorder %s2315_s14, 1  ;;  %s2315_s14 = sphi %s2342_s14, %s13_s14   ;;  %s2311_s13 = sphi %s2340_s13, %s3121_s13   ;;  %s2307_s12 = sphi %s2338_s12, %s3120_s12  }
   0x3   : > { %p34_p1 = scmp.ge.s32.totalorder %s32_s15, 48  ;;  %p191_p2 = scmp.lt.s32.totalorder %s2315_s14, 49 }
   0x5   : > { %s3123_s15 = smov (%p34_p1, %s32_s15), 0  ;;  %p192_p3 = pnand %p1845_p0, %p191_p2 }
   0x6   : > { %s1846_s20 = sshll.u32 (!%p192_p3), %s2307_s12, 6 }
   0x7   : > { %195 = sbr.rel (%p192_p3) target bundleno = 445 (0x1bd), region = 32  ;;  %p236_p4 = scmp.lt.s32.totalorder (!%p192_p3), %s1846_s20, 3071 }
   0xc   : > { %v2253_v0 = vld [vmem:[%s3117_s1 + $0x38] sm:$0xff]  ;;  %v2255_v1 = vld [vmem:[%s3117_s1 + $0x48] sm:$0xff]  ;;  %v2252_v2 = vld [vmem:[%s3117_s1 + $0x30] sm:$0xff]  ;;  %s3125_s20 = smov (!%p236_p4, %s1846_s20), 3071  ;;  %vm833_vm0 = vcmask 261120   ;;  %vm272_vm1 = vcmask 523264  }
   0xd   : > { %930 = vmatpush.bf16.msra.mxu0 %v2253_v0  ;;  %2256 = vmatpush.bf16.msra.mxu2 %v2253_v0  ;;  %v2254_v3 = vld [vmem:[%s3117_s1 + $0x40] sm:$0xff]  ;;  %s2181_s25 = sshll.u32 %s3125_s20, 3  ;;  %v2251_v4 = vld [vmem:[%s3117_s1 + $0x28] sm:$0xff]  ;;  %v2249_v12 = vld [vmem:[%s3117_s1 + $0x18] sm:$0xff]  ;;  %s1850_s19 = sshll.u32 %s3125_s20, 2  ;;  %vm1660_vm2 = vcmask 519168  }
   0xe   : > { %1105 = vmatpush.bf16.msra.mxu1 %v2255_v1  ;;  %2264 = vmatpush.bf16.msra.mxu3 %v2255_v1  ;;  %s2374_s28 = scalar_lea.vmem %s3116_s0, %s2181_s25  ;;  %v2250_v8 = vld [vmem:[%s3117_s1 + $0x20] sm:$0xff]  ;;  %v2248_v13 = vld [vmem:[%s3117_s1 + $0x10] sm:$0xff]  ;;  %v2247_v17 = vld [vmem:[%s3117_s1 + $0x8] sm:$0xff]  ;;  %s2628_s22 = scalar_lea.vmem %s3119_s3, %s1850_s19 }
   0xf   : > { %v2182_v5 = vld [vmem:[%s2374_s28 + $0x4] sm:$0xf]  ;;  %v1855_v6 = vld [vmem:[%s2374_s28 + $0x8] sm:$0xf0]  ;;  %v2216_v9 = vld [vmem:[%s2374_s28 + $0x114] sm:$0xf] }
  0x10   : > { %v1858_v7 = vor.u32 %v2182_v5, %v1855_v6  ;;  %v1991_v10 = vld [vmem:[%s2374_s28 + $0x118] sm:$0xf0]  ;;  %v2184_v14 = vld [vmem:[%s2374_s28 + $0x14] sm:$0xf]  ;;  %v2218_v18 = vld [vmem:[%s2374_s28 + $0x124] sm:$0xf] }
  0x11   : > { %931 = vmatpush.bf16.msra.mxu0 %v2252_v2  ;;  %2257 = vmatpush.bf16.msra.mxu2 %v2252_v2  ;;  %v1994_v11 = vor.u32 %v2216_v9, %v1991_v10  ;;  %v1863_v15 = vld [vmem:[%s2374_s28 + $0x18] sm:$0xf0]  ;;  %v1999_v19 = vld [vmem:[%s2374_s28 + $0x128] sm:$0xf0]  ;;  %v2246_v21 = vld [vmem:[%s3117_s1] sm:$0xff] }
  0x12   : > { %1106 = vmatpush.bf16.msra.mxu1 %v2254_v3  ;;  %2265 = vmatpush.bf16.msra.mxu3 %v2254_v3  ;;  %v1866_v16 = vor.u32 %v2184_v14, %v1863_v15  ;;  %v2002_v20 = vor.u32 %v2218_v18, %v1999_v19  ;;  %v1853_v22 = vld [vmem:[%s2374_s28] sm:$0xf]  ;;  %v2183_v23 = vld [vmem:[%s2374_s28 + $0x4] sm:$0xf0]  ;;  %v2186_v28 = vld [vmem:[%s2374_s28 + $0x24] sm:$0xf] }
  0x13   : > { %v1981_v24 = vld [vmem:[%s2374_s28 + $0x100] sm:$0xf]  ;;  %v2215_v25 = vld [vmem:[%s2374_s28 + $0x104] sm:$0xf0]  ;;  %v1854_v26 = vor.u32 %v2183_v23, %v1853_v22  ;;  %v1871_v29 = vld [vmem:[%s2374_s28 + $0x28] sm:$0xf0] }
  0x14   : > { %v1982_v27 = vor.u32 %v2215_v25, %v1981_v24  ;;  %v1874_v30 = vor.u32 %v2186_v28, %v1871_v29  ;;  %v2220_v31 = vld [vmem:[%s2374_s28 + $0x134] sm:$0xf]  ;;  %v2007_v32 = vld [vmem:[%s2374_s28 + $0x138] sm:$0xf0]  ;;  %v1861_v34 = vld [vmem:[%s2374_s28 + $0x10] sm:$0xf] }
  0x15   : > { %2147 = vmatmul.msk.bf16.vlgmr.msra.gmra.mxu1 %vm833_vm0, %v1858_v7  ;;  %932 = vmatpush.bf16.msra.mxu0 %v2251_v4  ;;  %v2010_v33 = vor.u32 %v2220_v31, %v2007_v32  ;;  %v2185_v35 = vld [vmem:[%s2374_s28 + $0x14] sm:$0xf0]  ;;  %v1989_v36 = vld [vmem:[%s2374_s28 + $0x110] sm:$0xf]  ;;  %v2188_v40 = vld [vmem:[%s2374_s28 + $0x34] sm:$0xf] }
  0x16   : > { %2258 = vmatpush.bf16.msra.mxu2 %v2251_v4  ;;  %2164 = vmatmul.msk.bf16.vlgmr.msra.gmra.mxu3 %vm833_vm0, %v1994_v11  ;;  %v2217_v37 = vld [vmem:[%s2374_s28 + $0x114] sm:$0xf0]  ;;  %v1862_v38 = vor.u32 %v2185_v35, %v1861_v34  ;;  %v1879_v41 = vld [vmem:[%s2374_s28 + $0x38] sm:$0xf0]  ;;  %v2222_v43 = vld [vmem:[%s2374_s28 + $0x144] sm:$0xf] }
  0x17   : > { %v1990_v39 = vor.u32 %v2217_v37, %v1989_v36  ;;  %v1882_v42 = vor.u32 %v2188_v40, %v1879_v41  ;;  %v2015_v44 = vld [vmem:[%s2374_s28 + $0x148] sm:$0xf0]  ;;  %v1869_v46 = vld [vmem:[%s2374_s28 + $0x20] sm:$0xf]  ;;  %v2187_v47 = vld [vmem:[%s2374_s28 + $0x24] sm:$0xf0] }
  0x18   : > { %v2018_v45 = vor.u32 %v2222_v43, %v2015_v44  ;;  %v1997_v48 = vld [vmem:[%s2374_s28 + $0x120] sm:$0xf]  ;;  %v2219_v49 = vld [vmem:[%s2374_s28 + $0x124] sm:$0xf0]  ;;  %v1870_v50 = vor.u32 %v2187_v47, %v1869_v46  ;;  %v2190_v52 = vld [vmem:[%s2374_s28 + $0x44] sm:$0xf] }
  0x19   : > { %933 = vmatpush.bf16.msra.mxu0 %v2250_v8  ;;  %v1998_v51 = vor.u32 %v2219_v49, %v1997_v48  ;;  %v1887_v53 = vld [vmem:[%s2374_s28 + $0x48] sm:$0xf0]  ;;  %v2224_v55 = vld [vmem:[%s2374_s28 + $0x154] sm:$0xf]  ;;  %v2023_v56 = vld [vmem:[%s2374_s28 + $0x158] sm:$0xf0] }
  0x1a   : > { %2259 = vmatpush.bf16.msra.mxu2 %v2250_v8  ;;  %v1890_v54 = vor.u32 %v2190_v52, %v1887_v53  ;;  %v2026_v57 = vor.u32 %v2224_v55, %v2023_v56  ;;  %v1877_v58 = vld [vmem:[%s2374_s28 + $0x30] sm:$0xf]  ;;  %v2189_v59 = vld [vmem:[%s2374_s28 + $0x34] sm:$0xf0]  ;;  %v2192_v0 = vld [vmem:[%s2374_s28 + $0x54] sm:$0xf] }
  0x1b   : > { %v2005_v60 = vld [vmem:[%s2374_s28 + $0x130] sm:$0xf]  ;;  %v2221_v61 = vld [vmem:[%s2374_s28 + $0x134] sm:$0xf0]  ;;  %v1878_v62 = vor.u32 %v2189_v59, %v1877_v58  ;;  %v1895_v1 = vld [vmem:[%s2374_s28 + $0x58] sm:$0xf0] }
  0x1c   : > { %v2006_v63 = vor.u32 %v2221_v61, %v2005_v60  ;;  %v1898_v2 = vor.u32 %v2192_v0, %v1895_v1  ;;  %v2226_v3 = vld [vmem:[%s2374_s28 + $0x164] sm:$0xf]  ;;  %v2031_v4 = vld [vmem:[%s2374_s28 + $0x168] sm:$0xf0]  ;;  %v1885_v6 = vld [vmem:[%s2374_s28 + $0x40] sm:$0xf] }
  0x1d   : > { %934 = vmatpush.bf16.msra.mxu0 %v2249_v12  ;;  %v2034_v5 = vor.u32 %v2226_v3, %v2031_v4  ;;  %v2191_v7 = vld [vmem:[%s2374_s28 + $0x44] sm:$0xf0]  ;;  %v2013_v8 = vld [vmem:[%s2374_s28 + $0x140] sm:$0xf]  ;;  %v2228_v15 = vld [vmem:[%s2374_s28 + $0x174] sm:$0xf] }
  0x1e   : > { %2260 = vmatpush.bf16.msra.mxu2 %v2249_v12  ;;  %v2223_v9 = vld [vmem:[%s2374_s28 + $0x144] sm:$0xf0]  ;;  %v1886_v10 = vor.u32 %v2191_v7, %v1885_v6  ;;  %v2194_v12 = vld [vmem:[%s2374_s28 + $0x64] sm:$0xf]  ;;  %v1893_v18 = vld [vmem:[%s2374_s28 + $0x50] sm:$0xf] }
  0x1f   : > { %v2014_v11 = vor.u32 %v2223_v9, %v2013_v8  ;;  %v2193_v19 = vld [vmem:[%s2374_s28 + $0x54] sm:$0xf0]  ;;  %v2196_v24 = vld [vmem:[%s2374_s28 + $0x74] sm:$0xf]  ;;  %v1911_v25 = vld [vmem:[%s2374_s28 + $0x78] sm:$0xf0] }
  0x20   : > { %v1894_v22 = vor.u32 %v2193_v19, %v1893_v18  ;;  %v2047_v28 = vld [vmem:[%s2374_s28 + $0x188] sm:$0xf0]  ;;  %v2195_v31 = vld [vmem:[%s2374_s28 + $0x64] sm:$0xf0]  ;;  %v2317_v32 = vmov 0.0  }
  0x21   : > { %935 = vmatpush.bf16.msra.mxu0 %v2248_v13  ;;  %273 = vst.msk [vmem:[#allocation2] sm:$0xff] %vm272_vm1, %v2317_v32  ;;  %v2227_v34 = vld [vmem:[%s2374_s28 + $0x164] sm:$0xf0]  ;;  %v2198_v37 = vld [vmem:[%s2374_s28 + $0x84] sm:$0xf] }
  0x22   : > { %2261 = vmatpush.bf16.msra.mxu2 %v2248_v13  ;;  %v1903_v13 = vld [vmem:[%s2374_s28 + $0x68] sm:$0xf0]  ;;  %274 = vst.msk [vmem:[#allocation2 + $0x8] sm:$0xff] %vm272_vm1, %v2317_v32  ;;  %v1909_v41 = vld [vmem:[%s2374_s28 + $0x70] sm:$0xf] }
  0x23   : > { %v1906_v14 = vor.u32 %v2194_v12, %v1903_v13  ;;  %275 = vst.msk [vmem:[#allocation2 + $0x10] sm:$0xff] %vm272_vm1, %v2317_v32  ;;  %v2037_v43 = vld [vmem:[%s2374_s28 + $0x170] sm:$0xf]  ;;  %v2229_v44 = vld [vmem:[%s2374_s28 + $0x174] sm:$0xf0] }
  0x24   : > { %276 = vst.msk [vmem:[#allocation2 + $0x18] sm:$0xff] %vm272_vm1, %v2317_v32  ;;  %v2038_v46 = vor.u32 %v2229_v44, %v2037_v43  ;;  %v2200_v48 = vld [vmem:[%s2374_s28 + $0x94] sm:$0xf]  ;;  %v1927_v49 = vld [vmem:[%s2374_s28 + $0x98] sm:$0xf0] }
  0x25   : > { %2148 = vmatmul.msk.bf16.gmra.mxu1 %vm833_vm0, %v1866_v16  ;;  %936 = vmatpush.bf16.msra.mxu0 %v2247_v17  ;;  %v2039_v16 = vld [vmem:[%s2374_s28 + $0x178] sm:$0xf0]  ;;  %277 = vst.msk [vmem:[#allocation2 + $0x20] sm:$0xff] %vm272_vm1, %v2317_v32  ;;  %v2232_v52 = vld [vmem:[%s2374_s28 + $0x194] sm:$0xf] }
  0x26   : > { %2262 = vmatpush.bf16.msra.mxu2 %v2247_v17  ;;  %2165 = vmatmul.msk.bf16.gmra.mxu3 %vm833_vm0, %v2002_v20  ;;  %v2042_v17 = vor.u32 %v2228_v15, %v2039_v16  ;;  %v2021_v20 = vld [vmem:[%s2374_s28 + $0x150] sm:$0xf]  ;;  %278 = vst.msk [vmem:[#allocation2 + $0x28] sm:$0xff] %vm272_vm1, %v2317_v32  ;;  %v2055_v53 = vld [vmem:[%s2374_s28 + $0x198] sm:$0xf0] }
  0x27   : > { %279 = vst.msk [vmem:[#allocation2 + $0x30] sm:$0xff] %vm272_vm1, %v2317_v32  ;;  %v1917_v55 = vld [vmem:[%s2374_s28 + $0x80] sm:$0xf]  ;;  %v2199_v56 = vld [vmem:[%s2374_s28 + $0x84] sm:$0xf0] }
  0x28   : > { %280 = vst.msk [vmem:[#allocation2 + $0x38] sm:$0xff] %vm272_vm1, %v2317_v32  ;;  %v2231_v58 = vld [vmem:[%s2374_s28 + $0x184] sm:$0xf0]  ;;  %v1918_v59 = vor.u32 %v2199_v56, %v1917_v55  ;;  %v337_v61 = vld [vmem:[#allocation2] sm:$0xff]  ;;  %v1935_v4 = vld [vmem:[%s2374_s28 + $0xa8] sm:$0xf0] }
  0x29   : > { %937 = vmatpush.bf16.msra.mxu0 %v2246_v21  ;;  %281 = vst.msk [vmem:[#allocation2 + $0x40] sm:$0xff] %vm272_vm1, %v2317_v32  ;;  %v2202_v3 = vld [vmem:[%s2374_s28 + $0xa4] sm:$0xf]  ;;  %v2591_v7 = vld [vmem:[%s3118_s2] ss:$0 sm:$0xff] }
  0x2a   : > { %2263 = vmatpush.bf16.msra.mxu2 %v2246_v21  ;;  %v2225_v21 = vld [vmem:[%s2374_s28 + $0x154] sm:$0xf0]  ;;  %282 = vst.msk [vmem:[#allocation2 + $0x48] sm:$0xff] %vm272_vm1, %v2317_v32  ;;  %v1938_v9 = vor.u32 %v2202_v3, %v1935_v4  ;;  %v2063_v12 = vld [vmem:[%s2374_s28 + $0x1a8] sm:$0xf0] }
  0x2b   : > { %v2022_v23 = vor.u32 %v2225_v21, %v2021_v20  ;;  %283 = vst.msk [vmem:[#allocation2 + $0x50] sm:$0xff] %vm272_vm1, %v2317_v32  ;;  %v1925_v15 = vld [vmem:[%s2374_s28 + $0x90] sm:$0xf]  ;;  %v2201_v16 = vld [vmem:[%s2374_s28 + $0x94] sm:$0xf0] }
  0x2c   : > { %938 = vmatmul.bf16.vlgmr.msra.gmra.mxu0 %v1854_v26  ;;  %v1914_v26 = vor.u32 %v2196_v24, %v1911_v25  ;;  %284 = vst.msk [vmem:[#allocation2 + $0x58] sm:$0xff] %vm272_vm1, %v2317_v32  ;;  %v2053_v18 = vld [vmem:[%s2374_s28 + $0x190] sm:$0xf]  ;;  %v2233_v19 = vld [vmem:[%s2374_s28 + $0x194] sm:$0xf0] }
  0x2d   : > { %1018 = vmatmul.bf16.vlgmr.msra.gmra.mxu2 %v1982_v27  ;;  %v2230_v27 = vld [vmem:[%s2374_s28 + $0x184] sm:$0xf]  ;;  %285 = vst.msk [vmem:[#allocation2 + $0x60] sm:$0xff] %vm272_vm1, %v2317_v32  ;;  %v2054_v25 = vor.u32 %v2233_v19, %v2053_v18  ;;  %v2236_v43 = vld [vmem:[%s2374_s28 + $0x1b4] sm:$0xf] }
  0x2e   : > { %v2050_v29 = vor.u32 %v2230_v27, %v2047_v28  ;;  %286 = vst.msk [vmem:[#allocation2 + $0x68] sm:$0xff] %vm272_vm1, %v2317_v32  ;;  %v2204_v28 = vld [vmem:[%s2374_s28 + $0xb4] sm:$0xf]  ;;  %v2071_v44 = vld [vmem:[%s2374_s28 + $0x1b8] sm:$0xf0] }
  0x2f   : > { %287 = vst.msk [vmem:[#allocation2 + $0x70] sm:$0xff] %vm272_vm1, %v2317_v32  ;;  %v2206_v3 = vld [vmem:[%s2374_s28 + $0xc4] sm:$0xf]  ;;  %v1951_v4 = vld [vmem:[%s2374_s28 + $0xc8] sm:$0xf0] }
  0x30   : > { %288 = vst.msk [vmem:[#allocation2 + $0x78] sm:$0xff] %vm272_vm1, %v2317_v32  ;;  %v1954_v18 = vor.u32 %v2206_v3, %v1951_v4 }
  0x31   : > { %289 = vst.msk [vmem:[#allocation2 + $0x80] sm:$0xff] %vm272_vm1, %v2317_v32 }
  0x32   : > { %290 = vst.msk [vmem:[#allocation2 + $0x88] sm:$0xff] %vm272_vm1, %v2317_v32 }
  0x33   : > { %291 = vst.msk [vmem:[#allocation2 + $0x90] sm:$0xff] %vm272_vm1, %v2317_v32 }
  0x34   : > { %292 = vst.msk [vmem:[#allocation2 + $0x98] sm:$0xff] %vm272_vm1, %v2317_v32 }
  0x35   : > { %2149 = vmatmul.msk.bf16.gmra.mxu1 %vm833_vm0, %v1874_v30  ;;  %v1901_v30 = vld [vmem:[%s2374_s28 + $0x60] sm:$0xf]  ;;  %293 = vst.msk [vmem:[#allocation2 + $0xa0] sm:$0xff] %vm272_vm1, %v2317_v32 }
  0x36   : > { %2166 = vmatmul.msk.bf16.gmra.mxu3 %vm833_vm0, %v2010_v33  ;;  %v2029_v33 = vld [vmem:[%s2374_s28 + $0x160] sm:$0xf]  ;;  %v1902_v35 = vor.u32 %v2195_v31, %v1901_v30  ;;  %294 = vst.msk [vmem:[#allocation2 + $0xa8] sm:$0xff] %vm272_vm1, %v2317_v32  ;;  %v338_v31 = vld [vmem:[#allocation2 + $0x8] sm:$0xff] }
  0x37   : > { %v2030_v36 = vor.u32 %v2227_v34, %v2029_v33  ;;  %295 = vst.msk [vmem:[#allocation2 + $0xb0] sm:$0xff] %vm272_vm1, %v2317_v32 }
  0x38   : > { %296 = vst.msk [vmem:[#allocation2 + $0xb8] sm:$0xff] %vm272_vm1, %v2317_v32 }
  0x39   : > { %297 = vst.msk [vmem:[#allocation2 + $0xc0] sm:$0xff] %vm272_vm1, %v2317_v32 }
  0x3a   : > { %298 = vst.msk [vmem:[#allocation2 + $0xc8] sm:$0xff] %vm272_vm1, %v2317_v32 }
  0x3b   : > { %299 = vst.msk [vmem:[#allocation2 + $0xd0] sm:$0xff] %vm272_vm1, %v2317_v32 }
  0x3c   : > { %943 = vmatmul.bf16.gmra.mxu0 %v1862_v38  ;;  %v1919_v38 = vld [vmem:[%s2374_s28 + $0x88] sm:$0xf0]  ;;  %300 = vst.msk [vmem:[#allocation2 + $0xd8] sm:$0xff] %vm272_vm1, %v2317_v32 }
  0x3d   : > { %1023 = vmatmul.bf16.gmra.mxu2 %v1990_v39  ;;  %v1922_v39 = vor.u32 %v2198_v37, %v1919_v38  ;;  %301 = vst.msk [vmem:[#allocation2 + $0xe0] sm:$0xff] %vm272_vm1, %v2317_v32 }
  0x3e   : > { %302 = vst.msk [vmem:[#allocation2 + $0xe8] sm:$0xff] %vm272_vm1, %v2317_v32 }
  0x3f   : > { %303 = vst.msk [vmem:[#allocation2 + $0xf0] sm:$0xff] %vm272_vm1, %v2317_v32 }
  0x40   : > { %304 = vst.msk [vmem:[#allocation2 + $0xf8] sm:$0xff] %vm272_vm1, %v2317_v32 }
  0x41   : > { %305 = vst.msk [vmem:[#allocation2 + $0x100] sm:$0xff] %vm272_vm1, %v2317_v32 }
  0x42   : > { %306 = vst.msk [vmem:[#allocation2 + $0x108] sm:$0xff] %vm272_vm1, %v2317_v32 }
  0x43   : > { %307 = vst.msk [vmem:[#allocation2 + $0x110] sm:$0xff] %vm272_vm1, %v2317_v32 }
  0x44   : > { %308 = vst.msk [vmem:[#allocation2 + $0x118] sm:$0xff] %vm272_vm1, %v2317_v32 }
  0x45   : > { %2150 = vmatmul.msk.bf16.gmra.mxu1 %vm833_vm0, %v1882_v42  ;;  %v2197_v42 = vld [vmem:[%s2374_s28 + $0x74] sm:$0xf0]  ;;  %309 = vst.msk [vmem:[#allocation2 + $0x120] sm:$0xff] %vm272_vm1, %v2317_v32 }
  0x46   : > { %2167 = vmatmul.msk.bf16.gmra.mxu3 %vm833_vm0, %v2018_v45  ;;  %v1910_v45 = vor.u32 %v2197_v42, %v1909_v41  ;;  %310 = vst.msk [vmem:[#allocation2 + $0x128] sm:$0xff] %vm272_vm1, %v2317_v32 }
  0x47   : > { %311 = vst.msk [vmem:[#allocation2 + $0x130] sm:$0xff] %vm272_vm1, %v2317_v32 }
  0x48   : > { %312 = vst.msk [vmem:[#allocation2 + $0x138] sm:$0xff] %vm272_vm1, %v2317_v32 }
  0x49   : > { %313 = vst.msk [vmem:[#allocation2 + $0x140] sm:$0xff] %vm272_vm1, %v2317_v32 }
  0x4a   : > { %314 = vst.msk [vmem:[#allocation2 + $0x148] sm:$0xff] %vm272_vm1, %v2317_v32 }
  0x4b   : > { %315 = vst.msk [vmem:[#allocation2 + $0x150] sm:$0xff] %vm272_vm1, %v2317_v32  ;;  %v372_v55 = vld [vmem:[#allocation2 + $0x118] sm:$0xff] }
  0x4c   : > { %948 = vmatmul.bf16.gmra.mxu0 %v1870_v50  ;;  %v1930_v50 = vor.u32 %v2200_v48, %v1927_v49  ;;  %316 = vst.msk [vmem:[#allocation2 + $0x158] sm:$0xff] %vm272_vm1, %v2317_v32 }
  0x4d   : > { %1028 = vmatmul.bf16.gmra.mxu2 %v1998_v51  ;;  %317 = vst.msk [vmem:[#allocation2 + $0x160] sm:$0xff] %vm272_vm1, %v2317_v32 }
  0x4e   : > { %318 = vst.msk [vmem:[#allocation2 + $0x168] sm:$0xff] %vm272_vm1, %v2317_v32 }
  0x4f   : > { %319 = vst.msk [vmem:[#allocation2 + $0x170] sm:$0xff] %vm272_vm1, %v2317_v32 }
  0x50   : > { %320 = vst.msk [vmem:[#allocation2 + $0x178] sm:$0xff] %vm272_vm1, %v2317_v32 }
  0x51   : > { %321 = vst.msk [vmem:[#allocation2 + $0x180] sm:$0xff] %vm272_vm1, %v2317_v32 }
  0x52   : > { %322 = vst.msk [vmem:[#allocation2 + $0x188] sm:$0xff] %vm272_vm1, %v2317_v32 }
  0x53   : > { %323 = vst.msk [vmem:[#allocation2 + $0x190] sm:$0xff] %vm272_vm1, %v2317_v32 }
  0x54   : > { %324 = vst.msk [vmem:[#allocation2 + $0x198] sm:$0xff] %vm272_vm1, %v2317_v32 }
  0x55   : > { %2151 = vmatmul.msk.bf16.gmra.mxu1 %vm833_vm0, %v1890_v54  ;;  %v2058_v54 = vor.u32 %v2232_v52, %v2055_v53  ;;  %325 = vst.msk [vmem:[#allocation2 + $0x1a0] sm:$0xff] %vm272_vm1, %v2317_v32  ;;  %v2061_v53 = vld [vmem:[%s2374_s28 + $0x1a0] sm:$0xf] }
  0x56   : > { %2168 = vmatmul.msk.bf16.gmra.mxu3 %vm833_vm0, %v2026_v57  ;;  %v2045_v57 = vld [vmem:[%s2374_s28 + $0x180] sm:$0xf]  ;;  %326 = vst.msk [vmem:[#allocation2 + $0x1a8] sm:$0xff] %vm272_vm1, %v2317_v32 }
  0x57   : > { %327 = vst.msk [vmem:[#allocation2 + $0x1b0] sm:$0xff] %vm272_vm1, %v2317_v32 }
  0x58   : > { %328 = vst.msk [vmem:[#allocation2 + $0x1b8] sm:$0xff] %vm272_vm1, %v2317_v32 }
  0x59   : > { %329 = vst.msk [vmem:[#allocation2 + $0x1c0] sm:$0xff] %vm272_vm1, %v2317_v32 }
  0x5a   : > { %330 = vst.msk [vmem:[#allocation2 + $0x1c8] sm:$0xff] %vm272_vm1, %v2317_v32 }
  0x5b   : > { %331 = vst.msk [vmem:[#allocation2 + $0x1d0] sm:$0xff] %vm272_vm1, %v2317_v32 }
  0x5c   : > { %953 = vmatmul.bf16.gmra.mxu0 %v1878_v62  ;;  %332 = vst.msk [vmem:[#allocation2 + $0x1d8] sm:$0xff] %vm272_vm1, %v2317_v32 }
  0x5d   : > { %1033 = vmatmul.bf16.gmra.mxu2 %v2006_v63  ;;  %v2046_v63 = vor.u32 %v2231_v58, %v2045_v57  ;;  %333 = vst.msk [vmem:[#allocation2 + $0x1e0] sm:$0xff] %vm272_vm1, %v2317_v32 }
  0x5e   : > { %334 = vst.msk [vmem:[#allocation2 + $0x1e8] sm:$0xff] %vm272_vm1, %v2317_v32 }
  0x5f   : > { %335 = vst.msk [vmem:[#allocation2 + $0x1f0] sm:$0xff] %vm272_vm1, %v2317_v32 }
  0x60   : > { %336 = vst.msk [vmem:[#allocation2 + $0x1f8] sm:$0xff] %vm272_vm1, %v2317_v32 }
  0x65   : > { %2152 = vmatmul.msk.bf16.gmra.mxu1 %vm833_vm0, %v1898_v2 }
  0x66   : > { %2169 = vmatmul.msk.bf16.gmra.mxu3 %vm833_vm0, %v2034_v5 }
  0x6c   : > { %958 = vmatmul.bf16.gmra.mxu0 %v1886_v10 }
  0x6d   : > { %1038 = vmatmul.bf16.gmra.mxu2 %v2014_v11  ;;  %v2234_v11 = vld [vmem:[%s2374_s28 + $0x1a4] sm:$0xf] }
  0x6e   : > { %v2066_v13 = vor.u32 %v2234_v11, %v2063_v12 }
  0x75   : > { %2153 = vmatmul.msk.bf16.gmra.mxu1 %vm833_vm0, %v1906_v14 }
  0x76   : > { %2170 = vmatmul.msk.bf16.gmra.mxu3 %vm833_vm0, %v2042_v17 }
  0x7c   : > { %963 = vmatmul.bf16.gmra.mxu0 %v1894_v22  ;;  %v1926_v22 = vor.u32 %v2201_v16, %v1925_v15 }
  0x7d   : > { %1043 = vmatmul.bf16.gmra.mxu2 %v2022_v23 }
  0x85   : > { %2154 = vmatmul.msk.bf16.gmra.mxu1 %vm833_vm0, %v1914_v26 }
  0x86   : > { %2171 = vmatmul.msk.bf16.gmra.mxu3 %vm833_vm0, %v2050_v29  ;;  %v1943_v29 = vld [vmem:[%s2374_s28 + $0xb8] sm:$0xf0] }
  0x8c   : > { %968 = vmatmul.bf16.gmra.mxu0 %v1902_v35 }
  0x8d   : > { %1048 = vmatmul.bf16.gmra.mxu2 %v2030_v36  ;;  %v339_v36 = vld [vmem:[#allocation2 + $0x10] sm:$0xff] }
  0x92   : > { %v1108_v40 = vpop.f32.mrf.mxu1 }
  0x95   : > { %2155 = vmatmul.msk.bf16.gmra.mxu1 %vm833_vm0, %v1922_v39  ;;  %v1946_v39 = vor.u32 %v2204_v28, %v1943_v29  ;;  %v2079_v28 = vld [vmem:[%s2374_s28 + $0x1c8] sm:$0xf0] }
  0x96   : > { %2172 = vmatmul.msk.bf16.gmra.mxu3 %vm833_vm0, %v2058_v54  ;;  %v2235_v54 = vld [vmem:[%s2374_s28 + $0x1a4] sm:$0xf0] }
  0x99   : > { %v2563_v60 = vpop.f32.mrf.mxu3 }
  0x9a   : > { %v2519_v47 = vpop.f32.mrf.mxu1 }
  0x9c   : > { %973 = vmatmul.bf16.gmra.mxu0 %v1910_v45 }
  0x9d   : > { %1053 = vmatmul.bf16.gmra.mxu2 %v2038_v46  ;;  %v340_v46 = vld [vmem:[#allocation2 + $0x18] sm:$0xff] }
  0xa1   : > { %v2586_v6 = vpop.f32.mrf.mxu3 }
  0xa2   : > { %v2539_v51 = vpop.f32.mrf.mxu1 }
  0xa5   : > { %2156 = vmatmul.msk.bf16.gmra.mxu1 %vm833_vm0, %v1930_v50  ;;  %v1933_v50 = vld [vmem:[%s2374_s28 + $0xa0] sm:$0xf] }
  0xa6   : > { %2173 = vmatmul.msk.bf16.gmra.mxu3 %vm833_vm0, %v2066_v13 }
  0xa9   : > { %v939_v62 = vpop.f32.mrf.mxu0  ;;  %v2623_v23 = vpop.f32.mrf.mxu3 }
  0xaa   : > { %v1109_v0 = vadd.f32 %v1108_v40, %v939_v62  ;;  %v2569_v1 = vpop.f32.mrf.mxu1  ;;  %v371_v40 = vld [vmem:[#allocation2 + $0x110] sm:$0xff] }
  0xac   : > { %v1268_v2 = vadd.f32 %v1109_v0, %v337_v61  ;;  %978 = vmatmul.bf16.gmra.mxu0 %v1918_v59  ;;  %v2062_v61 = vor.u32 %v2235_v54, %v2061_v53 }
  0xad   : > { %1058 = vmatmul.bf16.gmra.mxu2 %v2046_v63 }
  0xae   : > { %1333 = vst.msk [vmem:[#allocation2] sm:$0xff] %vm272_vm1, %v1268_v2 }
  0xb0   : > { %v2584_v5 = vpop.f32.mrf.mxu2 }
  0xb1   : > { %v941_v8 = vpop.f32.mrf.mxu0  ;;  %v2652_v35 = vpop.f32.mrf.mxu3 }
  0xb2   : > { %v2597_v10 = vpop.f32.mrf.mxu1  ;;  %v1111_v30 = vadd.f32 %v2519_v47, %v941_v8  ;;  %v2074_v47 = vor.u32 %v2236_v43, %v2071_v44 }
  0xb4   : > { %v1269_v45 = vadd.f32 %v1111_v30, %v338_v31  ;;  %v342_v31 = vld [vmem:[#allocation2 + $0x28] sm:$0xff] }
  0xb5   : > { %v1400_v14 = vld [vmem:[#allocation2] sm:$0xff]  ;;  %2157 = vmatmul.msk.bf16.gmra.mxu1 %vm833_vm0, %v1938_v9 }
  0xb6   : > { %v1468_v17 = vadd.f32 %v2591_v7, %v1400_v14  ;;  %2174 = vmatmul.msk.bf16.gmra.mxu3 %vm833_vm0, %v2074_v47  ;;  %1334 = vst.msk [vmem:[#allocation2 + $0x8] sm:$0xff] %vm272_vm1, %v1269_v45  ;;  %v2237_v47 = vld [vmem:[%s2374_s28 + $0x1b4] sm:$0xf0] }
  0xb8   : > { %v1532_v20 = vmax.f32 %v1468_v17, 0.0  ;;  %v2621_v21 = vpop.f32.mrf.mxu2 }
  0xb9   : > { %v944_v24 = vpop.f32.mrf.mxu0  ;;  %v2680_v58 = vpop.f32.mrf.mxu3 }
  0xba   : > { %v1596_v26 = vpack.c.bf16 %v1532_v20, %v1532_v20  ;;  %v2634_v27 = vpop.f32.mrf.mxu1  ;;  %v1114_v33 = vadd.f32 %v2539_v51, %v944_v24  ;;  %v2203_v51 = vld [vmem:[%s2374_s28 + $0xa4] sm:$0xf0] }
  0xbb   : > { %v1934_v57 = vor.u32 %v2203_v51, %v1933_v50  ;;  %v374_v50 = vld [vmem:[#allocation2 + $0x128] sm:$0xff] }
  0xbc   : > { %1661 = vst.msk [vmem:[%s2628_s22] sm:$0xf] %vm1660_vm2, %v1596_v26  ;;  %983 = vmatmul.bf16.gmra.mxu0 %v1926_v22  ;;  %v1270_v48 = vadd.f32 %v1114_v33, %v339_v36  ;;  %v373_v22 = vld [vmem:[#allocation2 + $0x120] sm:$0xff] }
  0xbd   : > { %1063 = vmatmul.bf16.gmra.mxu2 %v2054_v25  ;;  %v1401_v2 = vld [vmem:[#allocation2 + $0x8] sm:$0xff]  ;;  %v2238_v26 = vld [vmem:[%s2374_s28 + $0x1c4] sm:$0xf] }
  0xbe   : > { %1335 = vst.msk [vmem:[#allocation2 + $0x10] sm:$0xff] %vm272_vm1, %v1270_v48 }
  0xc0   : > { %v1024_v34 = vpop.f32.mrf.mxu2 }
  0xc1   : > { %v1194_v37 = vadd.f32 %v2563_v60, %v1024_v34  ;;  %v946_v38 = vpop.f32.mrf.mxu0  ;;  %v341_v60 = vld [vmem:[#allocation2 + $0x20] sm:$0xff]  ;;  %v2694_v12 = vpop.f32.mrf.mxu3 }
  0xc2   : > { %v1116_v41 = vadd.f32 %v2569_v1, %v946_v38  ;;  %v2660_v42 = vpop.f32.mrf.mxu1 }
  0xc3   : > { %v1302_v49 = vadd.f32 %v1194_v37, %v371_v40  ;;  %v1941_v37 = vld [vmem:[%s2374_s28 + $0xb0] sm:$0xf] }
  0xc4   : > { %v1271_v52 = vadd.f32 %v1116_v41, %v340_v46  ;;  %v2205_v41 = vld [vmem:[%s2374_s28 + $0xb4] sm:$0xf0]  ;;  %v2069_v46 = vld [vmem:[%s2374_s28 + $0x1b0] sm:$0xf] }
  0xc5   : > { %2158 = vmatmul.msk.bf16.gmra.mxu1 %vm833_vm0, %v1946_v39  ;;  %1367 = vst.msk [vmem:[#allocation2 + $0x110] sm:$0xff] %vm272_vm1, %v1302_v49  ;;  %v1402_v8 = vld [vmem:[#allocation2 + $0x10] sm:$0xff] }
  0xc6   : > { %1336 = vst.msk [vmem:[#allocation2 + $0x18] sm:$0xff] %vm272_vm1, %v1271_v52  ;;  %v1470_v9 = vadd.f32 %v2591_v7, %v1402_v8  ;;  %v1942_v52 = vor.u32 %v2205_v41, %v1941_v37 }
  0xc8   : > { %v1026_v56 = vpop.f32.mrf.mxu2  ;;  %v1534_v19 = vmax.f32 %v1470_v9, 0.0 }
  0xc9   : > { %v1196_v59 = vadd.f32 %v2586_v6, %v1026_v56  ;;  %v949_v32 = vpop.f32.mrf.mxu0  ;;  %v1469_v6 = vadd.f32 %v2591_v7, %v1401_v2  ;;  %v2720_v53 = vpop.f32.mrf.mxu3  ;;  %v343_v56 = vld [vmem:[#allocation2 + $0x30] sm:$0xff] }
  0xca   : > { %v1119_v62 = vadd.f32 %v2597_v10, %v949_v32  ;;  %v2686_v63 = vpop.f32.mrf.mxu1  ;;  %v1598_v33 = vpack.c.bf16 %v1534_v19, %v1534_v19 }
  0xcb   : > { %v1303_v0 = vadd.f32 %v1196_v59, %v372_v55  ;;  %v1533_v13 = vmax.f32 %v1469_v6, 0.0  ;;  %v2070_v59 = vor.u32 %v2237_v47, %v2069_v46 }
  0xcc   : > { %v1272_v1 = vadd.f32 %v1119_v62, %v341_v60  ;;  %988 = vmatmul.bf16.gmra.mxu0 %v1934_v57  ;;  %v1434_v10 = vld [vmem:[#allocation2 + $0x110] sm:$0xff]  ;;  %1663 = vst.msk [vmem:[%s2628_s22 + $0x8] sm:$0xf] %vm1660_vm2, %v1598_v33 }
  0xcd   : > { %1368 = vst.msk [vmem:[#allocation2 + $0x118] sm:$0xff] %vm272_vm1, %v1303_v0  ;;  %1068 = vmatmul.bf16.gmra.mxu2 %v2062_v61  ;;  %v1502_v14 = vadd.f32 %v2591_v7, %v1434_v10  ;;  %v1403_v15 = vld [vmem:[#allocation2 + $0x18] sm:$0xff]  ;;  %v1597_v29 = vpack.c.bf16 %v1533_v13, %v1533_v13 }
  0xce   : > { %1337 = vst.msk [vmem:[#allocation2 + $0x20] sm:$0xff] %vm272_vm1, %v1272_v1  ;;  %v1471_v20 = vadd.f32 %v2591_v7, %v1403_v15  ;;  %v1959_v1 = vld [vmem:[%s2374_s28 + $0xd8] sm:$0xf0] }
  0xcf   : > { %v1566_v30 = vmax.f32 %v1502_v14, 0.0  ;;  %1662 = vst.msk [vmem:[%s2628_s22 + $0x4] sm:$0xf] %vm1660_vm2, %v1597_v29  ;;  %v344_v10 = vld [vmem:[#allocation2 + $0x38] sm:$0xff] }
  0xd0   : > { %v1029_v11 = vpop.f32.mrf.mxu2  ;;  %v1535_v34 = vmax.f32 %v1471_v20, 0.0 }
  0xd1   : > { %v1199_v16 = vadd.f32 %v2623_v23, %v1029_v11  ;;  %v951_v17 = vpop.f32.mrf.mxu0  ;;  %v2082_v23 = vor.u32 %v2238_v26, %v2079_v28  ;;  %v2736_v4 = vpop.f32.mrf.mxu3 }
  0xd2   : > { %v1121_v24 = vadd.f32 %v2634_v27, %v951_v17  ;;  %v2700_v25 = vpop.f32.mrf.mxu1  ;;  %v1630_v27 = vpack.c.bf16 %v1566_v30, %v1566_v30  ;;  %v1599_v43 = vpack.c.bf16 %v1535_v34, %v1535_v34  ;;  %v2240_v17 = vld [vmem:[%s2374_s28 + $0x1d4] sm:$0xf]  ;;  %v2077_v34 = vld [vmem:[%s2374_s28 + $0x1c0] sm:$0xf] }
  0xd3   : > { %v1304_v40 = vadd.f32 %v1199_v16, %v373_v22  ;;  %2175 = vmatmul.msk.bf16.gmra.mxu3 %vm833_vm0, %v2082_v23 }
  0xd4   : > { %v1435_v36 = vld [vmem:[#allocation2 + $0x118] sm:$0xff]  ;;  %v1273_v45 = vadd.f32 %v1121_v24, %v342_v31  ;;  %1695 = vst.msk [vmem:[%s2628_s22 + $0x88] sm:$0xf] %vm1660_vm2, %v1630_v27  ;;  %v2207_v31 = vld [vmem:[%s2374_s28 + $0xc4] sm:$0xf0] }
  0xd5   : > { %v1503_v38 = vadd.f32 %v2591_v7, %v1435_v36  ;;  %v1404_v39 = vld [vmem:[#allocation2 + $0x20] sm:$0xff]  ;;  %2159 = vmatmul.msk.bf16.gmra.mxu1 %vm833_vm0, %v1954_v18  ;;  %1664 = vst.msk [vmem:[%s2628_s22 + $0xc] sm:$0xf] %vm1660_vm2, %v1599_v43  ;;  %v2087_v18 = vld [vmem:[%s2374_s28 + $0x1d8] sm:$0xf0] }
  0xd6   : > { %v1472_v44 = vadd.f32 %v2591_v7, %v1404_v39  ;;  %1369 = vst.msk [vmem:[#allocation2 + $0x120] sm:$0xff] %vm272_vm1, %v1304_v40  ;;  %v2090_v22 = vor.u32 %v2240_v17, %v2087_v18  ;;  %v2239_v36 = vld [vmem:[%s2374_s28 + $0x1c4] sm:$0xf0] }
  0xd7   : > { %v1567_v48 = vmax.f32 %v1503_v38, 0.0  ;;  %1338 = vst.msk [vmem:[#allocation2 + $0x28] sm:$0xff] %vm272_vm1, %v1273_v45  ;;  %v376_v38 = vld [vmem:[#allocation2 + $0x138] sm:$0xff]  ;;  %v345_v45 = vld [vmem:[#allocation2 + $0x40] sm:$0xff]  ;;  %v2078_v47 = vor.u32 %v2239_v36, %v2077_v34 }
  0xd8   : > { %v1536_v49 = vmax.f32 %v1472_v44, 0.0  ;;  %v1031_v51 = vpop.f32.mrf.mxu2 }
  0xd9   : > { %v1631_v54 = vpack.c.bf16 %v1567_v48, %v1567_v48  ;;  %v1201_v55 = vadd.f32 %v2652_v35, %v1031_v51  ;;  %v954_v57 = vpop.f32.mrf.mxu0  ;;  %v2208_v35 = vld [vmem:[%s2374_s28 + $0xd4] sm:$0xf]  ;;  %v2760_v41 = vpop.f32.mrf.mxu3 }
  0xda   : > { %v1600_v60 = vpack.c.bf16 %v1536_v49, %v1536_v49  ;;  %v1124_v32 = vadd.f32 %v2660_v42, %v954_v57  ;;  %v2726_v61 = vpop.f32.mrf.mxu1  ;;  %v375_v42 = vld [vmem:[#allocation2 + $0x130] sm:$0xff]  ;;  %v1962_v13 = vor.u32 %v2208_v35, %v1959_v1  ;;  %v1967_v57 = vld [vmem:[%s2374_s28 + $0xe8] sm:$0xf0] }
  0xdb   : > { %1696 = vst.msk [vmem:[%s2628_s22 + $0x8c] sm:$0xf] %vm1660_vm2, %v1631_v54  ;;  %v1305_v62 = vadd.f32 %v1201_v55, %v374_v50 }
  0xdc   : > { %1665 = vst.msk [vmem:[%s2628_s22 + $0x10] sm:$0xf] %vm1660_vm2, %v1600_v60  ;;  %v1274_v0 = vadd.f32 %v1124_v32, %v343_v56  ;;  %993 = vmatmul.bf16.gmra.mxu0 %v1942_v52  ;;  %v377_v32 = vld [vmem:[#allocation2 + $0x140] sm:$0xff] }
  0xdd   : > { %1370 = vst.msk [vmem:[#allocation2 + $0x128] sm:$0xff] %vm272_vm1, %v1305_v62  ;;  %1073 = vmatmul.bf16.gmra.mxu2 %v2070_v59  ;;  %v1436_v2 = vld [vmem:[#allocation2 + $0x120] sm:$0xff] }
  0xde   : > { %1339 = vst.msk [vmem:[#allocation2 + $0x30] sm:$0xff] %vm272_vm1, %v1274_v0  ;;  %v1504_v6 = vadd.f32 %v2591_v7, %v1436_v2  ;;  %v1405_v8 = vld [vmem:[#allocation2 + $0x28] sm:$0xff] }
  0xdf   : > { %v1473_v14 = vadd.f32 %v2591_v7, %v1405_v8  ;;  %v346_v2 = vld [vmem:[#allocation2 + $0x48] sm:$0xff] }
  0xe0   : > { %v1034_v3 = vpop.f32.mrf.mxu2  ;;  %v1568_v19 = vmax.f32 %v1504_v6, 0.0 }
  0xe1   : > { %v1204_v9 = vadd.f32 %v2680_v58, %v1034_v3  ;;  %v956_v11 = vpop.f32.mrf.mxu0  ;;  %v1537_v24 = vmax.f32 %v1473_v14, 0.0  ;;  %v2776_v0 = vpop.f32.mrf.mxu3 }
  0xe2   : > { %v1126_v15 = vadd.f32 %v2686_v63, %v956_v11  ;;  %v2742_v16 = vpop.f32.mrf.mxu1  ;;  %v1632_v28 = vpack.c.bf16 %v1568_v19, %v1568_v19  ;;  %v1949_v63 = vld [vmem:[%s2374_s28 + $0xc0] sm:$0xf]  ;;  %v2095_v11 = vld [vmem:[%s2374_s28 + $0x1e8] sm:$0xf0]  ;;  %v2209_v19 = vld [vmem:[%s2374_s28 + $0xd4] sm:$0xf0] }
  0xe3   : > { %v1306_v20 = vadd.f32 %v1204_v9, %v375_v42  ;;  %2176 = vmatmul.msk.bf16.gmra.mxu3 %vm833_vm0, %v2090_v22  ;;  %v1601_v23 = vpack.c.bf16 %v1537_v24, %v1537_v24  ;;  %v1950_v40 = vor.u32 %v2207_v31, %v1949_v63  ;;  %v2085_v22 = vld [vmem:[%s2374_s28 + $0x1d0] sm:$0xf]  ;;  %v2241_v24 = vld [vmem:[%s2374_s28 + $0x1d4] sm:$0xf0] }
  0xe4   : > { %v1437_v58 = vld [vmem:[#allocation2 + $0x128] sm:$0xff]  ;;  %v1275_v26 = vadd.f32 %v1126_v15, %v344_v10  ;;  %1697 = vst.msk [vmem:[%s2628_s22 + $0x90] sm:$0xf] %vm1660_vm2, %v1632_v28  ;;  %v2242_v10 = vld [vmem:[%s2374_s28 + $0x1e4] sm:$0xf]  ;;  %v2086_v36 = vor.u32 %v2241_v24, %v2085_v22 }
  0xe5   : > { %v1505_v29 = vadd.f32 %v2591_v7, %v1437_v58  ;;  %v1406_v30 = vld [vmem:[#allocation2 + $0x30] sm:$0xff]  ;;  %1371 = vst.msk [vmem:[#allocation2 + $0x130] sm:$0xff] %vm272_vm1, %v1306_v20  ;;  %2160 = vmatmul.msk.bf16.gmra.mxu1 %vm833_vm0, %v1962_v13  ;;  %v2098_v14 = vor.u32 %v2242_v10, %v2095_v11  ;;  %v378_v28 = vld [vmem:[#allocation2 + $0x148] sm:$0xff]  ;;  %v2093_v10 = vld [vmem:[%s2374_s28 + $0x1e0] sm:$0xf] }
  0xe6   : > { %v1474_v33 = vadd.f32 %v2591_v7, %v1406_v30  ;;  %1340 = vst.msk [vmem:[#allocation2 + $0x38] sm:$0xff] %vm272_vm1, %v1275_v26  ;;  %v2243_v11 = vld [vmem:[%s2374_s28 + $0x1e4] sm:$0xf0] }
  0xe7   : > { %v1569_v37 = vmax.f32 %v1505_v29, 0.0  ;;  %1666 = vst.msk [vmem:[%s2628_s22 + $0x14] sm:$0xf] %vm1660_vm2, %v1601_v23  ;;  %v2094_v24 = vor.u32 %v2243_v11, %v2093_v10 }
  0xe8   : > { %v1538_v27 = vmax.f32 %v1474_v33, 0.0  ;;  %v1036_v39 = vpop.f32.mrf.mxu2  ;;  %v347_v33 = vld [vmem:[#allocation2 + $0x50] sm:$0xff] }
  0xe9   : > { %v1633_v43 = vpack.c.bf16 %v1569_v37, %v1569_v37  ;;  %v1206_v44 = vadd.f32 %v2694_v12, %v1036_v39  ;;  %v959_v46 = vpop.f32.mrf.mxu0  ;;  %v2798_v63 = vpop.f32.mrf.mxu3 }
  0xea   : > { %v1602_v48 = vpack.c.bf16 %v1538_v27, %v1538_v27  ;;  %v1129_v49 = vadd.f32 %v2700_v25, %v959_v46  ;;  %v2764_v50 = vpop.f32.mrf.mxu1  ;;  %v2210_v25 = vld [vmem:[%s2374_s28 + $0xe4] sm:$0xf]  ;;  %v1975_v46 = vld [vmem:[%s2374_s28 + $0xf8] sm:$0xf0] }
  0xeb   : > { %1698 = vst.msk [vmem:[%s2628_s22 + $0x94] sm:$0xf] %vm1660_vm2, %v1633_v43  ;;  %v1307_v51 = vadd.f32 %v1206_v44, %v376_v38  ;;  %v1970_v3 = vor.u32 %v2210_v25, %v1967_v57 }
  0xec   : > { %1667 = vst.msk [vmem:[%s2628_s22 + $0x18] sm:$0xf] %vm1660_vm2, %v1602_v48  ;;  %v1438_v52 = vld [vmem:[#allocation2 + $0x130] sm:$0xff]  ;;  %v1276_v54 = vadd.f32 %v1129_v49, %v345_v45  ;;  %998 = vmatmul.bf16.gmra.mxu0 %v1950_v40 }
  0xed   : > { %v1506_v12 = vadd.f32 %v2591_v7, %v1438_v52  ;;  %v1407_v55 = vld [vmem:[#allocation2 + $0x38] sm:$0xff]  ;;  %1372 = vst.msk [vmem:[#allocation2 + $0x138] sm:$0xff] %vm272_vm1, %v1307_v51  ;;  %1078 = vmatmul.bf16.gmra.mxu2 %v2078_v47  ;;  %v379_v49 = vld [vmem:[#allocation2 + $0x150] sm:$0xff] }
  0xee   : > { %v1475_v56 = vadd.f32 %v2591_v7, %v1407_v55  ;;  %1341 = vst.msk [vmem:[#allocation2 + $0x40] sm:$0xff] %vm272_vm1, %v1276_v54  ;;  %v348_v55 = vld [vmem:[#allocation2 + $0x58] sm:$0xff] }
  0xef   : > { %v1570_v59 = vmax.f32 %v1506_v12, 0.0 }
  0xf0   : > { %v1539_v60 = vmax.f32 %v1475_v56, 0.0  ;;  %v1039_v62 = vpop.f32.mrf.mxu2 }
  0xf1   : > { %v1634_v35 = vpack.c.bf16 %v1570_v59, %v1570_v59  ;;  %v1209_v1 = vadd.f32 %v2720_v53, %v1039_v62  ;;  %v961_v42 = vpop.f32.mrf.mxu0  ;;  %v2814_v52 = vpop.f32.mrf.mxu3  ;;  %v2103_v62 = vld [vmem:[%s2374_s28 + $0x1f8] sm:$0xf0] }
  0xf2   : > { %v1603_v6 = vpack.c.bf16 %v1539_v60, %v1539_v60  ;;  %v1131_v8 = vadd.f32 %v2726_v61, %v961_v42  ;;  %v2780_v9 = vpop.f32.mrf.mxu1  ;;  %v1957_v61 = vld [vmem:[%s2374_s28 + $0xd0] sm:$0xf] }
  0xf3   : > { %1699 = vst.msk [vmem:[%s2628_s22 + $0x98] sm:$0xf] %vm1660_vm2, %v1634_v35  ;;  %v1308_v13 = vadd.f32 %v1209_v1, %v377_v32  ;;  %2177 = vmatmul.msk.bf16.gmra.mxu3 %vm833_vm0, %v2098_v14  ;;  %v1958_v30 = vor.u32 %v2209_v19, %v1957_v61  ;;  %v2244_v32 = vld [vmem:[%s2374_s28 + $0x1f4] sm:$0xf] }
  0xf4   : > { %1668 = vst.msk [vmem:[%s2628_s22 + $0x1c] sm:$0xf] %vm1660_vm2, %v1603_v6  ;;  %v1439_v53 = vld [vmem:[#allocation2 + $0x138] sm:$0xff]  ;;  %v1277_v15 = vadd.f32 %v1131_v8, %v346_v2  ;;  %v2106_v1 = vor.u32 %v2244_v32, %v2103_v62  ;;  %v2211_v6 = vld [vmem:[%s2374_s28 + $0xe4] sm:$0xf0] }
  0xf5   : > { %v1507_v17 = vadd.f32 %v2591_v7, %v1439_v53  ;;  %v1408_v18 = vld [vmem:[#allocation2 + $0x40] sm:$0xff]  ;;  %1373 = vst.msk [vmem:[#allocation2 + $0x140] sm:$0xff] %vm272_vm1, %v1308_v13  ;;  %2161 = vmatmul.msk.bf16.gmra.mxu1 %vm833_vm0, %v1970_v3  ;;  %v380_v53 = vld [vmem:[#allocation2 + $0x158] sm:$0xff]  ;;  %v382_v62 = vld [vmem:[#allocation2 + $0x168] sm:$0xff] }
  0xf6   : > { %v1476_v20 = vadd.f32 %v2591_v7, %v1408_v18  ;;  %1342 = vst.msk [vmem:[#allocation2 + $0x48] sm:$0xff] %vm272_vm1, %v1277_v15 }
  0xf7   : > { %v1571_v58 = vmax.f32 %v1507_v17, 0.0 }
  0xf8   : > { %v1540_v26 = vmax.f32 %v1476_v20, 0.0  ;;  %v1041_v29 = vpop.f32.mrf.mxu2  ;;  %v349_v20 = vld [vmem:[#allocation2 + $0x60] sm:$0xff] }
  0xf9   : > { %v1635_v31 = vpack.c.bf16 %v1571_v58, %v1571_v58  ;;  %v1211_v23 = vadd.f32 %v2736_v4, %v1041_v29  ;;  %v964_v34 = vpop.f32.mrf.mxu0  ;;  %v2836_v18 = vpop.f32.mrf.mxu3 }
  0xfa   : > { %v1604_v37 = vpack.c.bf16 %v1540_v26, %v1540_v26  ;;  %v1134_v27 = vadd.f32 %v2742_v16, %v964_v34  ;;  %v2802_v38 = vpop.f32.mrf.mxu1  ;;  %v2212_v16 = vld [vmem:[%s2374_s28 + $0xf4] sm:$0xf]  ;;  %v1983_v34 = vld [vmem:[%s2374_s28 + $0x108] sm:$0xf0] }
  0xfb   : > { %1700 = vst.msk [vmem:[%s2628_s22 + $0x9c] sm:$0xf] %vm1660_vm2, %v1635_v31  ;;  %v1309_v39 = vadd.f32 %v1211_v23, %v378_v28  ;;  %v1978_v25 = vor.u32 %v2212_v16, %v1975_v46 }
  0xfc   : > { %1669 = vst.msk [vmem:[%s2628_s22 + $0x20] sm:$0xf] %vm1660_vm2, %v1604_v37  ;;  %v1440_v40 = vld [vmem:[#allocation2 + $0x140] sm:$0xff]  ;;  %v1278_v43 = vadd.f32 %v1134_v27, %v347_v33  ;;  %1003 = vmatmul.bf16.gmra.mxu0 %v1958_v30 }
  0xfd   : > { %v1508_v4 = vadd.f32 %v2591_v7, %v1440_v40  ;;  %v1409_v44 = vld [vmem:[#allocation2 + $0x48] sm:$0xff]  ;;  %1374 = vst.msk [vmem:[#allocation2 + $0x148] sm:$0xff] %vm272_vm1, %v1309_v39  ;;  %1083 = vmatmul.bf16.gmra.mxu2 %v2086_v36  ;;  %v381_v27 = vld [vmem:[#allocation2 + $0x160] sm:$0xff] }
  0xfe   : > { %v1477_v45 = vadd.f32 %v2591_v7, %v1409_v44  ;;  %1343 = vst.msk [vmem:[#allocation2 + $0x50] sm:$0xff] %vm272_vm1, %v1278_v43  ;;  %v350_v44 = vld [vmem:[#allocation2 + $0x68] sm:$0xff] }
  0xff   : > { %v1572_v47 = vmax.f32 %v1508_v4, 0.0 }
 0x100   : > { %v1541_v48 = vmax.f32 %v1477_v45, 0.0  ;;  %v1044_v51 = vpop.f32.mrf.mxu2 }
 0x101   : > { %v1636_v54 = vpack.c.bf16 %v1572_v47, %v1572_v47  ;;  %v1214_v12 = vadd.f32 %v2760_v41, %v1044_v51  ;;  %v966_v56 = vpop.f32.mrf.mxu0  ;;  %v2852_v40 = vpop.f32.mrf.mxu3 }
 0x102   : > { %v1605_v57 = vpack.c.bf16 %v1541_v48, %v1541_v48  ;;  %v1136_v59 = vadd.f32 %v2764_v50, %v966_v56  ;;  %v2818_v60 = vpop.f32.mrf.mxu1  ;;  %v1965_v50 = vld [vmem:[%s2374_s28 + $0xe0] sm:$0xf]  ;;  %v2213_v56 = vld [vmem:[%s2374_s28 + $0xf4] sm:$0xf0] }
 0x103   : > { %1701 = vst.msk [vmem:[%s2628_s22 + $0xa0] sm:$0xf] %vm1660_vm2, %v1636_v54  ;;  %v1310_v35 = vadd.f32 %v1214_v12, %v379_v49  ;;  %2178 = vmatmul.msk.bf16.gmra.mxu3 %vm833_vm0, %v2106_v1  ;;  %v1966_v17 = vor.u32 %v2211_v6, %v1965_v50 }
 0x104   : > { %1670 = vst.msk [vmem:[%s2628_s22 + $0x24] sm:$0xf] %vm1660_vm2, %v1605_v57  ;;  %v1441_v41 = vld [vmem:[#allocation2 + $0x148] sm:$0xff]  ;;  %v1279_v2 = vadd.f32 %v1136_v59, %v348_v55  ;;  %v1973_v55 = vld [vmem:[%s2374_s28 + $0xf0] sm:$0xf] }
 0x105   : > { %v1509_v42 = vadd.f32 %v2591_v7, %v1441_v41  ;;  %v1410_v3 = vld [vmem:[#allocation2 + $0x50] sm:$0xff]  ;;  %1375 = vst.msk [vmem:[#allocation2 + $0x150] sm:$0xff] %vm272_vm1, %v1310_v35  ;;  %2162 = vmatmul.msk.bf16.gmra.mxu1 %vm833_vm0, %v1978_v25  ;;  %v2245_v57 = vld [vmem:[%s2374_s28 + $0x1f4] sm:$0xf0]  ;;  %v1974_v1 = vor.u32 %v2213_v56, %v1973_v55 }
 0x106   : > { %v1478_v8 = vadd.f32 %v2591_v7, %v1410_v3  ;;  %1344 = vst.msk [vmem:[#allocation2 + $0x58] sm:$0xff] %vm272_vm1, %v1279_v2  ;;  %v2101_v25 = vld [vmem:[%s2374_s28 + $0x1f0] sm:$0xf] }
 0x107   : > { %v1573_v13 = vmax.f32 %v1509_v42, 0.0  ;;  %v351_v3 = vld [vmem:[#allocation2 + $0x70] sm:$0xff]  ;;  %v2102_v6 = vor.u32 %v2245_v57, %v2101_v25 }
 0x108   : > { %v1542_v14 = vmax.f32 %v1478_v8, 0.0  ;;  %v1046_v15 = vpop.f32.mrf.mxu2 }
 0x109   : > { %v1637_v61 = vpack.c.bf16 %v1573_v13, %v1573_v13  ;;  %v1216_v19 = vadd.f32 %v2776_v0, %v1046_v15  ;;  %v969_v22 = vpop.f32.mrf.mxu0  ;;  %v2871_v41 = vpop.f32.mrf.mxu3 }
 0x10a   : > { %v1606_v58 = vpack.c.bf16 %v1542_v14, %v1542_v14  ;;  %v1139_v26 = vadd.f32 %v2780_v9, %v969_v22  ;;  %v2840_v28 = vpop.f32.mrf.mxu1  ;;  %v2214_v9 = vld [vmem:[%s2374_s28 + $0x104] sm:$0xf] }
 0x10b   : > { %1702 = vst.msk [vmem:[%s2628_s22 + $0xa4] sm:$0xf] %vm1660_vm2, %v1637_v61  ;;  %v1311_v29 = vadd.f32 %v1216_v19, %v380_v53  ;;  %v1986_v16 = vor.u32 %v2214_v9, %v1983_v34  ;;  %v383_v19 = vld [vmem:[#allocation2 + $0x170] sm:$0xff] }
 0x10c   : > { %1671 = vst.msk [vmem:[%s2628_s22 + $0x28] sm:$0xf] %vm1660_vm2, %v1606_v58  ;;  %v1442_v30 = vld [vmem:[#allocation2 + $0x150] sm:$0xff]  ;;  %v1280_v31 = vadd.f32 %v1139_v26, %v349_v20  ;;  %1008 = vmatmul.bf16.gmra.mxu0 %v1966_v17  ;;  %v352_v26 = vld [vmem:[#allocation2 + $0x78] sm:$0xff] }
 0x10d   : > { %v1510_v0 = vadd.f32 %v2591_v7, %v1442_v30  ;;  %v1411_v23 = vld [vmem:[#allocation2 + $0x58] sm:$0xff]  ;;  %1376 = vst.msk [vmem:[#allocation2 + $0x158] sm:$0xff] %vm272_vm1, %v1311_v29  ;;  %1088 = vmatmul.bf16.gmra.mxu2 %v2094_v24 }
 0x10e   : > { %v1479_v33 = vadd.f32 %v2591_v7, %v1411_v23  ;;  %1345 = vst.msk [vmem:[#allocation2 + $0x60] sm:$0xff] %vm272_vm1, %v1280_v31 }
 0x10f   : > { %v1574_v36 = vmax.f32 %v1510_v0, 0.0 }
 0x110   : > { %v1543_v37 = vmax.f32 %v1479_v33, 0.0  ;;  %v1049_v39 = vpop.f32.mrf.mxu2 }
 0x111   : > { %v1638_v43 = vpack.c.bf16 %v1574_v36, %v1574_v36  ;;  %v1219_v4 = vadd.f32 %v2798_v63, %v1049_v39  ;;  %v971_v45 = vpop.f32.mrf.mxu0  ;;  %v2885_v22 = vpop.f32.mrf.mxu3 }
 0x112   : > { %v1607_v46 = vpack.c.bf16 %v1543_v37, %v1543_v37  ;;  %v1141_v47 = vadd.f32 %v2802_v38, %v971_v45  ;;  %v2856_v48 = vpop.f32.mrf.mxu1  ;;  %v353_v45 = vld [vmem:[#allocation2 + $0x80] sm:$0xff] }
 0x113   : > { %1703 = vst.msk [vmem:[%s2628_s22 + $0xa8] sm:$0xf] %vm1660_vm2, %v1638_v43  ;;  %v1312_v49 = vadd.f32 %v1219_v4, %v381_v27  ;;  %v384_v27 = vld [vmem:[#allocation2 + $0x178] sm:$0xff] }
 0x114   : > { %1672 = vst.msk [vmem:[%s2628_s22 + $0x2c] sm:$0xf] %vm1660_vm2, %v1607_v46  ;;  %v1443_v51 = vld [vmem:[#allocation2 + $0x158] sm:$0xff]  ;;  %v1281_v54 = vadd.f32 %v1141_v47, %v350_v44 }
 0x115   : > { %v1511_v63 = vadd.f32 %v2591_v7, %v1443_v51  ;;  %v1412_v12 = vld [vmem:[#allocation2 + $0x60] sm:$0xff]  ;;  %1377 = vst.msk [vmem:[#allocation2 + $0x160] sm:$0xff] %vm272_vm1, %v1312_v49  ;;  %2163 = vmatmul.msk.bf16.gmra.mxu1 %vm833_vm0, %v1986_v16 }
 0x116   : > { %v1480_v38 = vadd.f32 %v2591_v7, %v1412_v12  ;;  %1346 = vst.msk [vmem:[#allocation2 + $0x68] sm:$0xff] %vm272_vm1, %v1281_v54 }
 0x117   : > { %v1575_v59 = vmax.f32 %v1511_v63, 0.0 }
 0x118   : > { %v1544_v32 = vmax.f32 %v1480_v38, 0.0  ;;  %v1051_v35 = vpop.f32.mrf.mxu2  ;;  %v385_v38 = vld [vmem:[#allocation2 + $0x180] sm:$0xff] }
 0x119   : > { %v1639_v2 = vpack.c.bf16 %v1575_v59, %v1575_v59  ;;  %v1221_v42 = vadd.f32 %v2814_v52, %v1051_v35  ;;  %v974_v50 = vpop.f32.mrf.mxu0  ;;  %v2899_v43 = vpop.f32.mrf.mxu3 }
 0x11a   : > { %v1608_v8 = vpack.c.bf16 %v1544_v32, %v1544_v32  ;;  %v1144_v10 = vadd.f32 %v2818_v60, %v974_v50  ;;  %v2875_v11 = vpop.f32.mrf.mxu1 }
 0x11b   : > { %1704 = vst.msk [vmem:[%s2628_s22 + $0xac] sm:$0xf] %vm1660_vm2, %v1639_v2  ;;  %v1313_v13 = vadd.f32 %v1221_v42, %v382_v62  ;;  %v354_v62 = vld [vmem:[#allocation2 + $0x88] sm:$0xff] }
 0x11c   : > { %1673 = vst.msk [vmem:[%s2628_s22 + $0x30] sm:$0xf] %vm1660_vm2, %v1608_v8  ;;  %v1444_v14 = vld [vmem:[#allocation2 + $0x160] sm:$0xff]  ;;  %v1282_v53 = vadd.f32 %v1144_v10, %v351_v3  ;;  %1013 = vmatmul.bf16.gmra.mxu0 %v1974_v1 }
 0x11d   : > { %v1512_v15 = vadd.f32 %v2591_v7, %v1444_v14  ;;  %v1413_v17 = vld [vmem:[#allocation2 + $0x68] sm:$0xff]  ;;  %1378 = vst.msk [vmem:[#allocation2 + $0x168] sm:$0xff] %vm272_vm1, %v1313_v13  ;;  %1093 = vmatmul.bf16.gmra.mxu2 %v2102_v6 }
 0x11e   : > { %v1481_v52 = vadd.f32 %v2591_v7, %v1413_v17  ;;  %1347 = vst.msk [vmem:[#allocation2 + $0x70] sm:$0xff] %vm272_vm1, %v1282_v53  ;;  %v386_v14 = vld [vmem:[#allocation2 + $0x188] sm:$0xff] }
 0x11f   : > { %v1576_v60 = vmax.f32 %v1512_v15, 0.0 }
 0x120   : > { %v1545_v61 = vmax.f32 %v1481_v52, 0.0  ;;  %v1054_v20 = vpop.f32.mrf.mxu2  ;;  %v355_v52 = vld [vmem:[#allocation2 + $0x90] sm:$0xff] }
 0x121   : > { %v1640_v24 = vpack.c.bf16 %v1576_v60, %v1576_v60  ;;  %v1224_v58 = vadd.f32 %v2836_v18, %v1054_v20  ;;  %v976_v29 = vpop.f32.mrf.mxu0  ;;  %v2913_v57 = vpop.f32.mrf.mxu3 }
 0x122   : > { %v1609_v30 = vpack.c.bf16 %v1545_v61, %v1545_v61  ;;  %v1146_v31 = vadd.f32 %v2840_v28, %v976_v29  ;;  %v2889_v0 = vpop.f32.mrf.mxu1 }
 0x123   : > { %1705 = vst.msk [vmem:[%s2628_s22 + $0xb0] sm:$0xf] %vm1660_vm2, %v1640_v24  ;;  %v1314_v23 = vadd.f32 %v1224_v58, %v383_v19 }
 0x124   : > { %1674 = vst.msk [vmem:[%s2628_s22 + $0x34] sm:$0xf] %vm1660_vm2, %v1609_v30  ;;  %v1445_v33 = vld [vmem:[#allocation2 + $0x168] sm:$0xff]  ;;  %v1283_v9 = vadd.f32 %v1146_v31, %v352_v26 }
 0x125   : > { %v1513_v34 = vadd.f32 %v2591_v7, %v1445_v33  ;;  %v1414_v36 = vld [vmem:[#allocation2 + $0x70] sm:$0xff]  ;;  %1379 = vst.msk [vmem:[#allocation2 + $0x170] sm:$0xff] %vm272_vm1, %v1314_v23 }
 0x126   : > { %v1482_v18 = vadd.f32 %v2591_v7, %v1414_v36  ;;  %1348 = vst.msk [vmem:[#allocation2 + $0x78] sm:$0xff] %vm272_vm1, %v1283_v9  ;;  %v387_v33 = vld [vmem:[#allocation2 + $0x190] sm:$0xff] }
 0x127   : > { %v1577_v28 = vmax.f32 %v1513_v34, 0.0 }
 0x128   : > { %v1546_v37 = vmax.f32 %v1482_v18, 0.0  ;;  %v1056_v39 = vpop.f32.mrf.mxu2  ;;  %v356_v18 = vld [vmem:[#allocation2 + $0x98] sm:$0xff] }
 0x129   : > { %v1641_v4 = vpack.c.bf16 %v1577_v28, %v1577_v28  ;;  %v1226_v44 = vadd.f32 %v2852_v40, %v1056_v39  ;;  %v979_v16 = vpop.f32.mrf.mxu0  ;;  %v1238_v24 = vpop.f32.mrf.mxu3 }
 0x12a   : > { %v1610_v46 = vpack.c.bf16 %v1546_v37, %v1546_v37  ;;  %v1149_v47 = vadd.f32 %v2856_v48, %v979_v16  ;;  %v2903_v49 = vpop.f32.mrf.mxu1  ;;  %v2950_v16 = vld [vmem:[%s3118_s2] ss:$0 sm:$0xff] }
 0x12b   : > { %1706 = vst.msk [vmem:[%s2628_s22 + $0xb4] sm:$0xf] %vm1660_vm2, %v1641_v4  ;;  %v1315_v51 = vadd.f32 %v1226_v44, %v384_v27 }
 0x12c   : > { %1675 = vst.msk [vmem:[%s2628_s22 + $0x38] sm:$0xf] %vm1660_vm2, %v1610_v46  ;;  %v1446_v54 = vld [vmem:[#allocation2 + $0x170] sm:$0xff]  ;;  %v1284_v63 = vadd.f32 %v1149_v47, %v353_v45 }
 0x12d   : > { %v1514_v12 = vadd.f32 %v2591_v7, %v1446_v54  ;;  %v1415_v55 = vld [vmem:[#allocation2 + $0x78] sm:$0xff]  ;;  %1380 = vst.msk [vmem:[#allocation2 + $0x178] sm:$0xff] %vm272_vm1, %v1315_v51 }
 0x12e   : > { %v1483_v40 = vadd.f32 %v2591_v7, %v1415_v55  ;;  %1349 = vst.msk [vmem:[#allocation2 + $0x80] sm:$0xff] %vm272_vm1, %v1284_v63  ;;  %v388_v54 = vld [vmem:[#allocation2 + $0x198] sm:$0xff] }
 0x12f   : > { %v1578_v48 = vmax.f32 %v1514_v12, 0.0 }
 0x130   : > { %v1547_v56 = vmax.f32 %v1483_v40, 0.0  ;;  %v1059_v25 = vpop.f32.mrf.mxu2  ;;  %v357_v40 = vld [vmem:[#allocation2 + $0xa0] sm:$0xff] }
 0x131   : > { %v1642_v59 = vpack.c.bf16 %v1578_v48, %v1578_v48  ;;  %v1229_v32 = vadd.f32 %v2871_v41, %v1059_v25  ;;  %v981_v35 = vpop.f32.mrf.mxu0  ;;  %v1240_v45 = vpop.f32.mrf.mxu3 }
 0x132   : > { %v1611_v1 = vpack.c.bf16 %v1547_v56, %v1547_v56  ;;  %v1151_v2 = vadd.f32 %v2875_v11, %v981_v35  ;;  %v2917_v42 = vpop.f32.mrf.mxu1 }
 0x133   : > { %1707 = vst.msk [vmem:[%s2628_s22 + $0xb8] sm:$0xf] %vm1660_vm2, %v1642_v59  ;;  %v1316_v3 = vadd.f32 %v1229_v32, %v385_v38 }
 0x134   : > { %1676 = vst.msk [vmem:[%s2628_s22 + $0x3c] sm:$0xf] %vm1660_vm2, %v1611_v1  ;;  %v1447_v50 = vld [vmem:[#allocation2 + $0x178] sm:$0xff]  ;;  %v1285_v6 = vadd.f32 %v1151_v2, %v354_v62 }
 0x135   : > { %v1515_v8 = vadd.f32 %v2591_v7, %v1447_v50  ;;  %v1416_v10 = vld [vmem:[#allocation2 + $0x80] sm:$0xff]  ;;  %1381 = vst.msk [vmem:[#allocation2 + $0x180] sm:$0xff] %vm272_vm1, %v1316_v3 }
 0x136   : > { %v1484_v41 = vadd.f32 %v2591_v7, %v1416_v10  ;;  %1350 = vst.msk [vmem:[#allocation2 + $0x88] sm:$0xff] %vm272_vm1, %v1285_v6  ;;  %v389_v50 = vld [vmem:[#allocation2 + $0x1a0] sm:$0xff] }
 0x137   : > { %v1579_v11 = vmax.f32 %v1515_v8, 0.0 }
 0x138   : > { %v1548_v13 = vmax.f32 %v1484_v41, 0.0  ;;  %v1061_v53 = vpop.f32.mrf.mxu2  ;;  %v358_v41 = vld [vmem:[#allocation2 + $0xa8] sm:$0xff] }
 0x139   : > { %v1643_v15 = vpack.c.bf16 %v1579_v11, %v1579_v11  ;;  %v1231_v17 = vadd.f32 %v2885_v22, %v1061_v53  ;;  %v984_v60 = vpop.f32.mrf.mxu0  ;;  %v1243_v2 = vpop.f32.mrf.mxu3 }
 0x13a   : > { %v1612_v61 = vpack.c.bf16 %v1548_v13, %v1548_v13  ;;  %v1154_v19 = vadd.f32 %v2889_v0, %v984_v60  ;;  %v2929_v20 = vpop.f32.mrf.mxu1 }
 0x13b   : > { %1708 = vst.msk [vmem:[%s2628_s22 + $0xbc] sm:$0xf] %vm1660_vm2, %v1643_v15  ;;  %v1317_v58 = vadd.f32 %v1231_v17, %v386_v14 }
 0x13c   : > { %1677 = vst.msk [vmem:[%s2628_s22 + $0x40] sm:$0xf] %vm1660_vm2, %v1612_v61  ;;  %v1448_v26 = vld [vmem:[#allocation2 + $0x180] sm:$0xff]  ;;  %v1286_v29 = vadd.f32 %v1154_v19, %v355_v52 }
 0x13d   : > { %v1516_v30 = vadd.f32 %v2591_v7, %v1448_v26  ;;  %v1417_v31 = vld [vmem:[#allocation2 + $0x88] sm:$0xff]  ;;  %1382 = vst.msk [vmem:[#allocation2 + $0x188] sm:$0xff] %vm272_vm1, %v1317_v58 }
 0x13e   : > { %v1485_v22 = vadd.f32 %v2591_v7, %v1417_v31  ;;  %1351 = vst.msk [vmem:[#allocation2 + $0x90] sm:$0xff] %vm272_vm1, %v1286_v29  ;;  %v390_v58 = vld [vmem:[#allocation2 + $0x1a8] sm:$0xff] }
 0x13f   : > { %v1580_v0 = vmax.f32 %v1516_v30, 0.0 }
 0x140   : > { %v1549_v23 = vmax.f32 %v1485_v22, 0.0  ;;  %v1064_v9 = vpop.f32.mrf.mxu2  ;;  %v359_v22 = vld [vmem:[#allocation2 + $0xb0] sm:$0xff] }
 0x141   : > { %v1644_v34 = vpack.c.bf16 %v1580_v0, %v1580_v0  ;;  %v1234_v36 = vadd.f32 %v2899_v43, %v1064_v9  ;;  %v986_v28 = vpop.f32.mrf.mxu0  ;;  %v1245_v29 = vpop.f32.mrf.mxu3 }
 0x142   : > { %v1613_v37 = vpack.c.bf16 %v1549_v23, %v1549_v23  ;;  %v1156_v27 = vadd.f32 %v2903_v49, %v986_v28  ;;  %v2941_v39 = vpop.f32.mrf.mxu1 }
 0x143   : > { %1709 = vst.msk [vmem:[%s2628_s22 + $0xc0] sm:$0xf] %vm1660_vm2, %v1644_v34  ;;  %v1318_v4 = vadd.f32 %v1234_v36, %v387_v33 }
 0x144   : > { %1678 = vst.msk [vmem:[%s2628_s22 + $0x44] sm:$0xf] %vm1660_vm2, %v1613_v37  ;;  %v1449_v7 = vld [vmem:[#allocation2 + $0x188] sm:$0xff]  ;;  %v1287_v44 = vadd.f32 %v1156_v27, %v356_v18 }
 0x145   : > { %v1517_v43 = vadd.f32 %v2950_v16, %v1449_v7  ;;  %v1418_v46 = vld [vmem:[#allocation2 + $0x90] sm:$0xff]  ;;  %1383 = vst.msk [vmem:[#allocation2 + $0x190] sm:$0xff] %vm272_vm1, %v1318_v4 }
 0x146   : > { %v1486_v47 = vadd.f32 %v2950_v16, %v1418_v46  ;;  %1352 = vst.msk [vmem:[#allocation2 + $0x98] sm:$0xff] %vm272_vm1, %v1287_v44  ;;  %v391_v7 = vld [vmem:[#allocation2 + $0x1b0] sm:$0xff]  ;;  %v360_v46 = vld [vmem:[#allocation2 + $0xb8] sm:$0xff] }
 0x147   : > { %v1581_v49 = vmax.f32 %v1517_v43, 0.0 }
 0x148   : > { %v1550_v51 = vmax.f32 %v1486_v47, 0.0  ;;  %v1066_v63 = vpop.f32.mrf.mxu2 }
 0x149   : > { %v1645_v12 = vpack.c.bf16 %v1581_v49, %v1581_v49  ;;  %v1236_v55 = vadd.f32 %v2913_v57, %v1066_v63  ;;  %v989_v48 = vpop.f32.mrf.mxu0 }
 0x14a   : > { %v1614_v56 = vpack.c.bf16 %v1550_v51, %v1550_v51  ;;  %v1159_v38 = vadd.f32 %v2917_v42, %v989_v48  ;;  %v2958_v25 = vpop.f32.mrf.mxu1 }
 0x14b   : > { %1710 = vst.msk [vmem:[%s2628_s22 + $0xc4] sm:$0xf] %vm1660_vm2, %v1645_v12  ;;  %v1319_v59 = vadd.f32 %v1236_v55, %v388_v54 }
 0x14c   : > { %1679 = vst.msk [vmem:[%s2628_s22 + $0x48] sm:$0xf] %vm1660_vm2, %v1614_v56  ;;  %v1450_v32 = vld [vmem:[#allocation2 + $0x190] sm:$0xff]  ;;  %v1288_v62 = vadd.f32 %v1159_v38, %v357_v40 }
 0x14d   : > { %v1518_v35 = vadd.f32 %v2950_v16, %v1450_v32  ;;  %v1419_v1 = vld [vmem:[#allocation2 + $0x98] sm:$0xff]  ;;  %1384 = vst.msk [vmem:[#allocation2 + $0x198] sm:$0xff] %vm272_vm1, %v1319_v59 }
 0x14e   : > { %v1487_v57 = vadd.f32 %v2950_v16, %v1419_v1  ;;  %1353 = vst.msk [vmem:[#allocation2 + $0xa0] sm:$0xff] %vm272_vm1, %v1288_v62  ;;  %v392_v32 = vld [vmem:[#allocation2 + $0x1b8] sm:$0xff] }
 0x14f   : > { %v1582_v42 = vmax.f32 %v1518_v35, 0.0 }
 0x150   : > { %v1551_v3 = vmax.f32 %v1487_v57, 0.0  ;;  %v1069_v6 = vpop.f32.mrf.mxu2  ;;  %v361_v57 = vld [vmem:[#allocation2 + $0xc0] sm:$0xff] }
 0x151   : > { %v1646_v8 = vpack.c.bf16 %v1582_v42, %v1582_v42  ;;  %v1239_v10 = vadd.f32 %v1238_v24, %v1069_v6  ;;  %v991_v11 = vpop.f32.mrf.mxu0 }
 0x152   : > { %v1615_v13 = vpack.c.bf16 %v1551_v3, %v1551_v3  ;;  %v1161_v14 = vadd.f32 %v2929_v20, %v991_v11  ;;  %v2969_v53 = vpop.f32.mrf.mxu1 }
 0x153   : > { %1711 = vst.msk [vmem:[%s2628_s22 + $0xc8] sm:$0xf] %vm1660_vm2, %v1646_v8  ;;  %v1320_v15 = vadd.f32 %v1239_v10, %v389_v50 }
 0x154   : > { %1680 = vst.msk [vmem:[%s2628_s22 + $0x4c] sm:$0xf] %vm1660_vm2, %v1615_v13  ;;  %v1451_v17 = vld [vmem:[#allocation2 + $0x198] sm:$0xff]  ;;  %v1289_v52 = vadd.f32 %v1161_v14, %v358_v41 }
 0x155   : > { %v1519_v60 = vadd.f32 %v2950_v16, %v1451_v17  ;;  %v1420_v61 = vld [vmem:[#allocation2 + $0xa0] sm:$0xff]  ;;  %1385 = vst.msk [vmem:[#allocation2 + $0x1a0] sm:$0xff] %vm272_vm1, %v1320_v15 }
 0x156   : > { %v1488_v19 = vadd.f32 %v2950_v16, %v1420_v61  ;;  %1354 = vst.msk [vmem:[#allocation2 + $0xa8] sm:$0xff] %vm272_vm1, %v1289_v52  ;;  %v1248_v63 = vpop.f32.mrf.mxu3  ;;  %v393_v17 = vld [vmem:[#allocation2 + $0x1c0] sm:$0xff] }
 0x157   : > { %v1583_v20 = vmax.f32 %v1519_v60, 0.0 }
 0x158   : > { %v1552_v24 = vmax.f32 %v1488_v19, 0.0  ;;  %v1071_v26 = vpop.f32.mrf.mxu2  ;;  %v362_v19 = vld [vmem:[#allocation2 + $0xc8] sm:$0xff] }
 0x159   : > { %v1647_v30 = vpack.c.bf16 %v1583_v20, %v1583_v20  ;;  %v1241_v31 = vadd.f32 %v1240_v45, %v1071_v26  ;;  %v994_v0 = vpop.f32.mrf.mxu0 }
 0x15a   : > { %v1616_v23 = vpack.c.bf16 %v1552_v24, %v1552_v24  ;;  %v1164_v33 = vadd.f32 %v2941_v39, %v994_v0  ;;  %v2980_v9 = vpop.f32.mrf.mxu1 }
 0x15b   : > { %1712 = vst.msk [vmem:[%s2628_s22 + $0xcc] sm:$0xf] %vm1660_vm2, %v1647_v30  ;;  %v1321_v34 = vadd.f32 %v1241_v31, %v390_v58 }
 0x15c   : > { %1681 = vst.msk [vmem:[%s2628_s22 + $0x50] sm:$0xf] %vm1660_vm2, %v1616_v23  ;;  %v1452_v36 = vld [vmem:[#allocation2 + $0x1a0] sm:$0xff]  ;;  %v1290_v18 = vadd.f32 %v1164_v33, %v359_v22 }
 0x15d   : > { %v1520_v28 = vadd.f32 %v2950_v16, %v1452_v36  ;;  %v1421_v37 = vld [vmem:[#allocation2 + $0xa8] sm:$0xff]  ;;  %1386 = vst.msk [vmem:[#allocation2 + $0x1a8] sm:$0xff] %vm272_vm1, %v1321_v34 }
 0x15e   : > { %v1489_v27 = vadd.f32 %v2950_v16, %v1421_v37  ;;  %1355 = vst.msk [vmem:[#allocation2 + $0xb0] sm:$0xff] %vm272_vm1, %v1290_v18  ;;  %v1250_v41 = vpop.f32.mrf.mxu3  ;;  %v394_v36 = vld [vmem:[#allocation2 + $0x1c8] sm:$0xff] }
 0x15f   : > { %v1584_v39 = vmax.f32 %v1520_v28, 0.0 }
 0x160   : > { %v1553_v4 = vmax.f32 %v1489_v27, 0.0  ;;  %v1074_v44 = vpop.f32.mrf.mxu2  ;;  %v363_v27 = vld [vmem:[#allocation2 + $0xd0] sm:$0xff] }
 0x161   : > { %v1648_v45 = vpack.c.bf16 %v1584_v39, %v1584_v39  ;;  %v1244_v43 = vadd.f32 %v1243_v2, %v1074_v44  ;;  %v996_v47 = vpop.f32.mrf.mxu0 }
 0x162   : > { %v1617_v49 = vpack.c.bf16 %v1553_v4, %v1553_v4  ;;  %v1166_v51 = vadd.f32 %v2958_v25, %v996_v47  ;;  %v2991_v54 = vpop.f32.mrf.mxu1 }
 0x163   : > { %1713 = vst.msk [vmem:[%s2628_s22 + $0xd0] sm:$0xf] %vm1660_vm2, %v1648_v45  ;;  %v1322_v12 = vadd.f32 %v1244_v43, %v391_v7 }
 0x164   : > { %1682 = vst.msk [vmem:[%s2628_s22 + $0x54] sm:$0xf] %vm1660_vm2, %v1617_v49  ;;  %v1453_v55 = vld [vmem:[#allocation2 + $0x1a8] sm:$0xff]  ;;  %v1291_v40 = vadd.f32 %v1166_v51, %v360_v46 }
 0x165   : > { %v1521_v48 = vadd.f32 %v2950_v16, %v1453_v55  ;;  %v1422_v56 = vld [vmem:[#allocation2 + $0xb0] sm:$0xff]  ;;  %1387 = vst.msk [vmem:[#allocation2 + $0x1b0] sm:$0xff] %vm272_vm1, %v1322_v12 }
 0x166   : > { %v1490_v38 = vadd.f32 %v2950_v16, %v1422_v56  ;;  %1356 = vst.msk [vmem:[#allocation2 + $0xb8] sm:$0xff] %vm272_vm1, %v1291_v40  ;;  %v1253_v33 = vpop.f32.mrf.mxu3  ;;  %v395_v12 = vld [vmem:[#allocation2 + $0x1d0] sm:$0xff] }
 0x167   : > { %v1585_v25 = vmax.f32 %v1521_v48, 0.0 }
 0x168   : > { %v1554_v59 = vmax.f32 %v1490_v38, 0.0  ;;  %v1076_v62 = vpop.f32.mrf.mxu2  ;;  %v364_v38 = vld [vmem:[#allocation2 + $0xd8] sm:$0xff] }
 0x169   : > { %v1649_v35 = vpack.c.bf16 %v1585_v25, %v1585_v25  ;;  %v1246_v1 = vadd.f32 %v1245_v29, %v1076_v62  ;;  %v999_v2 = vpop.f32.mrf.mxu0 }
 0x16a   : > { %v1618_v42 = vpack.c.bf16 %v1554_v59, %v1554_v59  ;;  %v1169_v3 = vadd.f32 %v2969_v53, %v999_v2  ;;  %v3002_v50 = vpop.f32.mrf.mxu1 }
 0x16b   : > { %1714 = vst.msk [vmem:[%s2628_s22 + $0xd4] sm:$0xf] %vm1660_vm2, %v1649_v35  ;;  %v1323_v6 = vadd.f32 %v1246_v1, %v392_v32 }
 0x16c   : > { %1683 = vst.msk [vmem:[%s2628_s22 + $0x58] sm:$0xf] %vm1660_vm2, %v1618_v42  ;;  %v1454_v8 = vld [vmem:[#allocation2 + $0x1b0] sm:$0xff]  ;;  %v1292_v10 = vadd.f32 %v1169_v3, %v361_v57 }
 0x16d   : > { %v1522_v11 = vadd.f32 %v2950_v16, %v1454_v8  ;;  %v1423_v13 = vld [vmem:[#allocation2 + $0xb8] sm:$0xff]  ;;  %1388 = vst.msk [vmem:[#allocation2 + $0x1b8] sm:$0xff] %vm272_vm1, %v1323_v6 }
 0x16e   : > { %v1491_v14 = vadd.f32 %v2950_v16, %v1423_v13  ;;  %1357 = vst.msk [vmem:[#allocation2 + $0xc0] sm:$0xff] %vm272_vm1, %v1292_v10  ;;  %v1255_v40 = vpop.f32.mrf.mxu3  ;;  %v396_v8 = vld [vmem:[#allocation2 + $0x1d8] sm:$0xff]  ;;  %v365_v13 = vld [vmem:[#allocation2 + $0xe0] sm:$0xff] }
 0x16f   : > { %v1586_v53 = vmax.f32 %v1522_v11, 0.0 }
 0x170   : > { %v1555_v15 = vmax.f32 %v1491_v14, 0.0  ;;  %v1079_v52 = vpop.f32.mrf.mxu2 }
 0x171   : > { %v1650_v60 = vpack.c.bf16 %v1586_v53, %v1586_v53  ;;  %v1249_v61 = vadd.f32 %v1248_v63, %v1079_v52  ;;  %v1001_v20 = vpop.f32.mrf.mxu0 }
 0x172   : > { %v1619_v24 = vpack.c.bf16 %v1555_v15, %v1555_v15  ;;  %v1171_v58 = vadd.f32 %v2980_v9, %v1001_v20  ;;  %v3013_v26 = vpop.f32.mrf.mxu1 }
 0x173   : > { %1715 = vst.msk [vmem:[%s2628_s22 + $0xd8] sm:$0xf] %vm1660_vm2, %v1650_v60  ;;  %v1324_v29 = vadd.f32 %v1249_v61, %v393_v17 }
 0x174   : > { %1684 = vst.msk [vmem:[%s2628_s22 + $0x5c] sm:$0xf] %vm1660_vm2, %v1619_v24  ;;  %v1455_v30 = vld [vmem:[#allocation2 + $0x1b8] sm:$0xff]  ;;  %v1293_v31 = vadd.f32 %v1171_v58, %v362_v19 }
 0x175   : > { %v1523_v22 = vadd.f32 %v2950_v16, %v1455_v30  ;;  %v1424_v0 = vld [vmem:[#allocation2 + $0xc0] sm:$0xff]  ;;  %1389 = vst.msk [vmem:[#allocation2 + $0x1c0] sm:$0xff] %vm272_vm1, %v1324_v29 }
 0x176   : > { %v1492_v23 = vadd.f32 %v2950_v16, %v1424_v0  ;;  %1358 = vst.msk [vmem:[#allocation2 + $0xc8] sm:$0xff] %vm272_vm1, %v1293_v31  ;;  %v1258_v15 = vpop.f32.mrf.mxu3  ;;  %v397_v30 = vld [vmem:[#allocation2 + $0x1e0] sm:$0xff] }
 0x177   : > { %v1587_v9 = vmax.f32 %v1523_v22, 0.0 }
 0x178   : > { %v1556_v34 = vmax.f32 %v1492_v23, 0.0  ;;  %v1081_v18 = vpop.f32.mrf.mxu2  ;;  %v366_v23 = vld [vmem:[#allocation2 + $0xe8] sm:$0xff] }
 0x179   : > { %v1651_v28 = vpack.c.bf16 %v1587_v9, %v1587_v9  ;;  %v1251_v37 = vadd.f32 %v1250_v41, %v1081_v18  ;;  %v1004_v39 = vpop.f32.mrf.mxu0 }
 0x17a   : > { %v1620_v4 = vpack.c.bf16 %v1556_v34, %v1556_v34  ;;  %v1174_v7 = vadd.f32 %v2991_v54, %v1004_v39  ;;  %v3024_v44 = vpop.f32.mrf.mxu1 }
 0x17b   : > { %1716 = vst.msk [vmem:[%s2628_s22 + $0xdc] sm:$0xf] %vm1660_vm2, %v1651_v28  ;;  %v1325_v45 = vadd.f32 %v1251_v37, %v394_v36  ;;  %v369_v36 = vld [vmem:[#allocation2 + $0x100] sm:$0xff] }
 0x17c   : > { %1685 = vst.msk [vmem:[%s2628_s22 + $0x60] sm:$0xf] %vm1660_vm2, %v1620_v4  ;;  %v1456_v43 = vld [vmem:[#allocation2 + $0x1c0] sm:$0xff]  ;;  %v1294_v46 = vadd.f32 %v1174_v7, %v363_v27 }
 0x17d   : > { %v1524_v47 = vadd.f32 %v2950_v16, %v1456_v43  ;;  %v1425_v49 = vld [vmem:[#allocation2 + $0xc8] sm:$0xff]  ;;  %1390 = vst.msk [vmem:[#allocation2 + $0x1c8] sm:$0xff] %vm272_vm1, %v1325_v45 }
 0x17e   : > { %v1493_v51 = vadd.f32 %v2950_v16, %v1425_v49  ;;  %1359 = vst.msk [vmem:[#allocation2 + $0xd0] sm:$0xff] %vm272_vm1, %v1294_v46  ;;  %v1260_v39 = vpop.f32.mrf.mxu3 }
 0x17f   : > { %v1588_v54 = vmax.f32 %v1524_v47, 0.0  ;;  %v398_v47 = vld [vmem:[#allocation2 + $0x1e8] sm:$0xff] }
 0x180   : > { %v1557_v63 = vmax.f32 %v1493_v51, 0.0  ;;  %v1084_v55 = vpop.f32.mrf.mxu2 }
 0x181   : > { %v1652_v48 = vpack.c.bf16 %v1588_v54, %v1588_v54  ;;  %v1254_v56 = vadd.f32 %v1253_v33, %v1084_v55  ;;  %v1006_v25 = vpop.f32.mrf.mxu0 }
 0x182   : > { %v1621_v59 = vpack.c.bf16 %v1557_v63, %v1557_v63  ;;  %v1176_v32 = vadd.f32 %v3002_v50, %v1006_v25  ;;  %v3035_v62 = vpop.f32.mrf.mxu1  ;;  %v367_v63 = vld [vmem:[#allocation2 + $0xf0] sm:$0xff] }
 0x183   : > { %1717 = vst.msk [vmem:[%s2628_s22 + $0xe0] sm:$0xf] %vm1660_vm2, %v1652_v48  ;;  %v1326_v35 = vadd.f32 %v1254_v56, %v395_v12  ;;  %v370_v48 = vld [vmem:[#allocation2 + $0x108] sm:$0xff] }
 0x184   : > { %1686 = vst.msk [vmem:[%s2628_s22 + $0x64] sm:$0xf] %vm1660_vm2, %v1621_v59  ;;  %v1457_v1 = vld [vmem:[#allocation2 + $0x1c8] sm:$0xff]  ;;  %v1295_v57 = vadd.f32 %v1176_v32, %v364_v38 }
 0x185   : > { %v1525_v2 = vadd.f32 %v2950_v16, %v1457_v1  ;;  %v1426_v42 = vld [vmem:[#allocation2 + $0xd0] sm:$0xff]  ;;  %1391 = vst.msk [vmem:[#allocation2 + $0x1d0] sm:$0xff] %vm272_vm1, %v1326_v35 }
 0x186   : > { %v1494_v3 = vadd.f32 %v2950_v16, %v1426_v42  ;;  %1360 = vst.msk [vmem:[#allocation2 + $0xd8] sm:$0xff] %vm272_vm1, %v1295_v57  ;;  %v1263_v42 = vpop.f32.mrf.mxu3 }
 0x187   : > { %v1589_v50 = vmax.f32 %v1525_v2, 0.0 }
 0x188   : > { %v1558_v6 = vmax.f32 %v1494_v3, 0.0  ;;  %v1086_v10 = vpop.f32.mrf.mxu2 }
 0x189   : > { %v1653_v41 = vpack.c.bf16 %v1589_v50, %v1589_v50  ;;  %v1256_v11 = vadd.f32 %v1255_v40, %v1086_v10  ;;  %v1009_v14 = vpop.f32.mrf.mxu0 }
 0x18a   : > { %v1622_v53 = vpack.c.bf16 %v1558_v6, %v1558_v6  ;;  %v1179_v17 = vadd.f32 %v3013_v26, %v1009_v14  ;;  %v3046_v52 = vpop.f32.mrf.mxu1  ;;  %v399_v6 = vld [vmem:[#allocation2 + $0x1f0] sm:$0xff] }
 0x18b   : > { %1718 = vst.msk [vmem:[%s2628_s22 + $0xe4] sm:$0xf] %vm1660_vm2, %v1653_v41  ;;  %v1327_v60 = vadd.f32 %v1256_v11, %v396_v8 }
 0x18c   : > { %1687 = vst.msk [vmem:[%s2628_s22 + $0x68] sm:$0xf] %vm1660_vm2, %v1622_v53  ;;  %v1458_v61 = vld [vmem:[#allocation2 + $0x1d0] sm:$0xff]  ;;  %v1296_v19 = vadd.f32 %v1179_v17, %v365_v13  ;;  %v368_v13 = vld [vmem:[#allocation2 + $0xf8] sm:$0xff] }
 0x18d   : > { %v1526_v20 = vadd.f32 %v2950_v16, %v1458_v61  ;;  %v1427_v24 = vld [vmem:[#allocation2 + $0xd8] sm:$0xff]  ;;  %1392 = vst.msk [vmem:[#allocation2 + $0x1d8] sm:$0xff] %vm272_vm1, %v1327_v60 }
 0x18e   : > { %v1495_v58 = vadd.f32 %v2950_v16, %v1427_v24  ;;  %1361 = vst.msk [vmem:[#allocation2 + $0xe0] sm:$0xff] %vm272_vm1, %v1296_v19 }
 0x18f   : > { %v1590_v26 = vmax.f32 %v1526_v20, 0.0 }
 0x190   : > { %v1559_v29 = vmax.f32 %v1495_v58, 0.0  ;;  %v1089_v31 = vpop.f32.mrf.mxu2 }
 0x191   : > { %v1654_v22 = vpack.c.bf16 %v1590_v26, %v1590_v26  ;;  %v1259_v0 = vadd.f32 %v1258_v15, %v1089_v31  ;;  %v1011_v33 = vpop.f32.mrf.mxu0  ;;  %v1265_v31 = vpop.f32.mrf.mxu3 }
 0x192   : > { %v1623_v9 = vpack.c.bf16 %v1559_v29, %v1559_v29  ;;  %v1181_v34 = vadd.f32 %v3024_v44, %v1011_v33  ;;  %v1188_v18 = vpop.f32.mrf.mxu1 }
 0x193   : > { %1719 = vst.msk [vmem:[%s2628_s22 + $0xe8] sm:$0xf] %vm1660_vm2, %v1654_v22  ;;  %v1328_v28 = vadd.f32 %v1259_v0, %v397_v30  ;;  %v1189_v37 = vadd.f32 %v1188_v18, %v2584_v5  ;;  %v400_v22 = vld [vmem:[#allocation2 + $0x1f8] sm:$0xff] }
 0x194   : > { %1688 = vst.msk [vmem:[%s2628_s22 + $0x6c] sm:$0xf] %vm1660_vm2, %v1623_v9  ;;  %v1459_v27 = vld [vmem:[#allocation2 + $0x1d8] sm:$0xff]  ;;  %v1297_v4 = vadd.f32 %v1181_v34, %v366_v23 }
 0x195   : > { %v1527_v7 = vadd.f32 %v2950_v16, %v1459_v27  ;;  %v1428_v45 = vld [vmem:[#allocation2 + $0xe0] sm:$0xff]  ;;  %1393 = vst.msk [vmem:[#allocation2 + $0x1e0] sm:$0xff] %vm272_vm1, %v1328_v28  ;;  %v1300_v43 = vadd.f32 %v1189_v37, %v369_v36 }
 0x196   : > { %v1496_v44 = vadd.f32 %v2950_v16, %v1428_v45  ;;  %1362 = vst.msk [vmem:[#allocation2 + $0xe8] sm:$0xff] %vm272_vm1, %v1297_v4 }
 0x197   : > { %v1591_v46 = vmax.f32 %v1527_v7, 0.0  ;;  %1365 = vst.msk [vmem:[#allocation2 + $0x100] sm:$0xff] %vm272_vm1, %v1300_v43 }
 0x198   : > { %v1560_v5 = vmax.f32 %v1496_v44, 0.0  ;;  %v1091_v49 = vpop.f32.mrf.mxu2 }
 0x199   : > { %v1655_v51 = vpack.c.bf16 %v1591_v46, %v1591_v46  ;;  %v1261_v54 = vadd.f32 %v1260_v39, %v1091_v49  ;;  %v1014_v12 = vpop.f32.mrf.mxu0 }
 0x19a   : > { %v1624_v55 = vpack.c.bf16 %v1560_v5, %v1560_v5  ;;  %v1184_v40 = vadd.f32 %v3035_v62, %v1014_v12  ;;  %v1190_v56 = vpop.f32.mrf.mxu1 }
 0x19b   : > { %1720 = vst.msk [vmem:[%s2628_s22 + $0xec] sm:$0xf] %vm1660_vm2, %v1655_v51  ;;  %v1329_v38 = vadd.f32 %v1261_v54, %v398_v47  ;;  %v1191_v25 = vadd.f32 %v1190_v56, %v2621_v21 }
 0x19c   : > { %1689 = vst.msk [vmem:[%s2628_s22 + $0x70] sm:$0xf] %vm1660_vm2, %v1624_v55  ;;  %v1460_v59 = vld [vmem:[#allocation2 + $0x1e0] sm:$0xff]  ;;  %v1298_v32 = vadd.f32 %v1184_v40, %v367_v63 }
 0x19d   : > { %v1528_v35 = vadd.f32 %v2950_v16, %v1460_v59  ;;  %v1429_v1 = vld [vmem:[#allocation2 + $0xe8] sm:$0xff]  ;;  %1394 = vst.msk [vmem:[#allocation2 + $0x1e8] sm:$0xff] %vm272_vm1, %v1329_v38  ;;  %v1301_v57 = vadd.f32 %v1191_v25, %v370_v48 }
 0x19e   : > { %v1497_v2 = vadd.f32 %v2950_v16, %v1429_v1  ;;  %v1432_v62 = vld [vmem:[#allocation2 + $0x100] sm:$0xff]  ;;  %1363 = vst.msk [vmem:[#allocation2 + $0xf0] sm:$0xff] %vm272_vm1, %v1298_v32 }
 0x19f   : > { %v1592_v3 = vmax.f32 %v1528_v35, 0.0  ;;  %v1500_v21 = vadd.f32 %v2950_v16, %v1432_v62  ;;  %1366 = vst.msk [vmem:[#allocation2 + $0x108] sm:$0xff] %vm272_vm1, %v1301_v57 }
 0x1a0   : > { %v1561_v50 = vmax.f32 %v1497_v2, 0.0  ;;  %v1094_v8 = vpop.f32.mrf.mxu2 }
 0x1a1   : > { %v1656_v10 = vpack.c.bf16 %v1592_v3, %v1592_v3  ;;  %v1564_v41 = vmax.f32 %v1500_v21, 0.0  ;;  %v1264_v11 = vadd.f32 %v1263_v42, %v1094_v8  ;;  %v1016_v14 = vpop.f32.mrf.mxu0 }
 0x1a2   : > { %v1625_v53 = vpack.c.bf16 %v1561_v50, %v1561_v50  ;;  %v1186_v15 = vadd.f32 %v3046_v52, %v1016_v14 }
 0x1a3   : > { %1721 = vst.msk [vmem:[%s2628_s22 + $0xf0] sm:$0xf] %vm1660_vm2, %v1656_v10  ;;  %v1628_v17 = vpack.c.bf16 %v1564_v41, %v1564_v41  ;;  %v1330_v60 = vadd.f32 %v1264_v11, %v399_v6 }
 0x1a4   : > { %1690 = vst.msk [vmem:[%s2628_s22 + $0x74] sm:$0xf] %vm1660_vm2, %v1625_v53  ;;  %v1461_v61 = vld [vmem:[#allocation2 + $0x1e8] sm:$0xff]  ;;  %v1299_v19 = vadd.f32 %v1186_v15, %v368_v13 }
 0x1a5   : > { %1693 = vst.msk [vmem:[%s2628_s22 + $0x80] sm:$0xf] %vm1660_vm2, %v1628_v17  ;;  %v1529_v20 = vadd.f32 %v2950_v16, %v1461_v61  ;;  %v1430_v24 = vld [vmem:[#allocation2 + $0xf0] sm:$0xff] }
 0x1a6   : > { %v1498_v58 = vadd.f32 %v2950_v16, %v1430_v24  ;;  %v1433_v26 = vld [vmem:[#allocation2 + $0x108] sm:$0xff]  ;;  %1395 = vst.msk [vmem:[#allocation2 + $0x1f0] sm:$0xff] %vm272_vm1, %v1330_v60 }
 0x1a7   : > { %v1593_v52 = vmax.f32 %v1529_v20, 0.0  ;;  %v1501_v29 = vadd.f32 %v2950_v16, %v1433_v26  ;;  %1364 = vst.msk [vmem:[#allocation2 + $0xf8] sm:$0xff] %vm272_vm1, %v1299_v19 }
 0x1a8   : > { %v1562_v30 = vmax.f32 %v1498_v58, 0.0  ;;  %v1096_v0 = vpop.f32.mrf.mxu2 }
 0x1a9   : > { %v1657_v23 = vpack.c.bf16 %v1593_v52, %v1593_v52  ;;  %v1565_v33 = vmax.f32 %v1501_v29, 0.0  ;;  %v1266_v9 = vadd.f32 %v1265_v31, %v1096_v0 }
 0x1aa   : > { %v1626_v34 = vpack.c.bf16 %v1562_v30, %v1562_v30 }
 0x1ab   : > { %1722 = vst.msk [vmem:[%s2628_s22 + $0xf4] sm:$0xf] %vm1660_vm2, %v1657_v23  ;;  %v1629_v36 = vpack.c.bf16 %v1565_v33, %v1565_v33  ;;  %v1331_v18 = vadd.f32 %v1266_v9, %v400_v22 }
 0x1ac   : > { %1691 = vst.msk [vmem:[%s2628_s22 + $0x78] sm:$0xf] %vm1660_vm2, %v1626_v34 }
 0x1ad   : > { %1694 = vst.msk [vmem:[%s2628_s22 + $0x84] sm:$0xf] %vm1660_vm2, %v1629_v36  ;;  %v1462_v28 = vld [vmem:[#allocation2 + $0x1f0] sm:$0xff] }
 0x1ae   : > { %v1530_v37 = vadd.f32 %v2950_v16, %v1462_v28  ;;  %v1431_v27 = vld [vmem:[#allocation2 + $0xf8] sm:$0xff]  ;;  %1396 = vst.msk [vmem:[#allocation2 + $0x1f8] sm:$0xff] %vm272_vm1, %v1331_v18 }
 0x1af   : > { %v1499_v39 = vadd.f32 %v2950_v16, %v1431_v27 }
 0x1b0   : > { %v1594_v4 = vmax.f32 %v1530_v37, 0.0 }
 0x1b1   : > { %v1563_v7 = vmax.f32 %v1499_v39, 0.0 }
 0x1b2   : > { %v1658_v45 = vpack.c.bf16 %v1594_v4, %v1594_v4 }
 0x1b3   : > { %v1627_v43 = vpack.c.bf16 %v1563_v7, %v1563_v7 }
 0x1b4   : > { %1723 = vst.msk [vmem:[%s2628_s22 + $0xf8] sm:$0xf] %vm1660_vm2, %v1658_v45 }
 0x1b5   : > { %1692 = vst.msk [vmem:[%s2628_s22 + $0x7c] sm:$0xf] %vm1660_vm2, %v1627_v43  ;;  %v1463_v44 = vld [vmem:[#allocation2 + $0x1f8] sm:$0xff] }
 0x1b6   : > { %v1531_v46 = vadd.f32 %v2950_v16, %v1463_v44 }
 0x1b8   : > { %v1595_v5 = vmax.f32 %v1531_v46, 0.0 }
 0x1ba   : > { %v1659_v47 = vpack.c.bf16 %v1595_v5, %v1595_v5 }
 0x1bc   : > { %1724 = vst.msk [vmem:[%s2628_s22 + $0xfc] sm:$0xf] %vm1660_vm2, %v1659_v47 }
 0x1bd PF: > { %s13_s14 = sadd.s32 1, %s2315_s14   ;;  %s3120_s12 = smov %s2311_s13 }
 0x1be   : > { %p10_p5 = scmp.ge.s32.totalorder %s13_s14, 50   ;;  %s3121_s13 = smov %s3123_s15 }
 0x1c0   :  { %12 = sbr.rel (!%p10_p5) target bundleno = 2 (0x2), region = 76 }

</bundles_post_ra>
